<compile_context>
chip_gen: v5e
topology: v5e:2x2
jax: 0.10.0
libtpu: 0.0.40
codegen_flags: <defaults>
</compile_context>

<pallas_src>
import functools
import math

import numpy as np
import jax
import jax.numpy as jnp
from jax.experimental import pallas as pl
from jax.experimental.pallas import tpu as pltpu

LAYER_NORM_EPS = 1e-5
NEG_INF = -1e9


def _round_up(x, m):
    return ((x + m - 1) // m) * m


# ----------------------------- Pallas kernels ------------------------------

def _linear_kernel(*refs, activation, has_bias):
    if has_bias:
        x_ref, w_ref, b_ref, o_ref, acc_ref = refs
    else:
        x_ref, w_ref, o_ref, acc_ref = refs
        b_ref = None

    @pl.when(pl.program_id(2) == 0)
    def _init():
        acc_ref[...] = jnp.zeros_like(acc_ref)

    acc_ref[...] += jnp.dot(x_ref[...], w_ref[...],
                            preferred_element_type=jnp.float32)

    @pl.when(pl.program_id(2) == pl.num_programs(2) - 1)
    def _flush():
        y = acc_ref[...]
        if has_bias:
            y = y + b_ref[...].astype(jnp.float32)
        if activation == "relu":
            y = jnp.maximum(y, 0.0)
        o_ref[...] = y.astype(o_ref.dtype)


def linear(x2d, w, b=None, activation=None, *, compute_dtype=None,
           tm=256, tn=256, tk=512):
    """y = act(x2d @ w + b);  x2d: [M,K], w: [K,N], b: [N] or None.

    Tiled over a (M,N,K) grid with an f32 VMEM accumulator; operands are cast
    to `compute_dtype` (e.g. bf16) before the call, accumulation stays f32.
    """
    M, K = x2d.shape
    Kw, N = w.shape
    assert K == Kw
    cdt = compute_dtype or x2d.dtype

    tm = min(tm, _round_up(M, 8))
    tn = min(tn, _round_up(N, 128))
    tk = min(tk, _round_up(K, 128))
    Mp, Np, Kp = _round_up(M, tm), _round_up(N, tn), _round_up(K, tk)

    xp = jnp.pad(x2d, ((0, Mp - M), (0, Kp - K))).astype(cdt)
    wp = jnp.pad(w, ((0, Kp - K), (0, Np - N))).astype(cdt)

    has_bias = b is not None
    inputs = [xp, wp]
    in_specs = [
        pl.BlockSpec((tm, tk), lambda i, j, k: (i, k)),
        pl.BlockSpec((tk, tn), lambda i, j, k: (k, j)),
    ]
    if has_bias:
        bp = jnp.pad(b.astype(jnp.float32).reshape(1, N), ((0, 0), (0, Np - N)))
        inputs.append(bp)
        in_specs.append(pl.BlockSpec((1, tn), lambda i, j, k: (0, j)))

    # VMEM budget: double-buffered input tiles + output tile + f32 accumulator,
    # with headroom; capped below v7x's 64 MiB physical VMEM per TensorCore.
    ibytes = jnp.dtype(cdt).itemsize
    vmem_est = 2 * (tm * tk + tk * tn) * ibytes + 3 * tm * tn * 4 + tn * 4
    vmem_limit = min(max(4 * vmem_est, 32 * 1024 * 1024), 48 * 1024 * 1024)

    out = pl.pallas_call(
        functools.partial(_linear_kernel, activation=activation,
                          has_bias=has_bias),
        out_shape=jax.ShapeDtypeStruct((Mp, Np), jnp.float32),
        grid_spec=pltpu.PrefetchScalarGridSpec(
            num_scalar_prefetch=0,
            grid=(Mp // tm, Np // tn, Kp // tk),
            in_specs=in_specs,
            out_specs=pl.BlockSpec((tm, tn), lambda i, j, k: (i, j)),
            scratch_shapes=[pltpu.VMEM((tm, tn), jnp.float32)]),
        compiler_params=pltpu.CompilerParams(
            dimension_semantics=("parallel", "parallel", "arbitrary"),
            vmem_limit_bytes=vmem_limit),
    )(*inputs)

    if Mp != M or Np != N:
        out = out[:M, :N]
    return out


def _add_layernorm_kernel(*refs, has_residual):
    if has_residual:
        x_ref, r_ref, g_ref, b_ref, o_ref = refs
    else:
        x_ref, g_ref, b_ref, o_ref = refs
        r_ref = None
    x = x_ref[...].astype(jnp.float32)
    if has_residual:
        x = x + r_ref[...].astype(jnp.float32)
    mean = jnp.mean(x, axis=-1, keepdims=True)
    cen = x - mean
    var = jnp.mean(cen * cen, axis=-1, keepdims=True)
    y = cen * jax.lax.rsqrt(var + LAYER_NORM_EPS)
    o_ref[...] = (y * g_ref[...] + b_ref[...]).astype(o_ref.dtype)


def add_layer_norm(x, residual, gamma, beta, *, block_rows=256):
    """layer_norm(x + residual) with the residual add fused into the kernel."""
    shp = x.shape
    D = shp[-1]
    x2 = x.reshape(-1, D)
    M = x2.shape[0]
    bm = min(block_rows, _round_up(M, 8))
    Mp = _round_up(M, bm)

    inputs = [jnp.pad(x2, ((0, Mp - M), (0, 0)))]
    in_specs = [pl.BlockSpec((bm, D), lambda i: (i, 0))]
    has_residual = residual is not None
    if has_residual:
        inputs.append(jnp.pad(residual.reshape(-1, D), ((0, Mp - M), (0, 0))))
        in_specs.append(pl.BlockSpec((bm, D), lambda i: (i, 0)))
    inputs += [gamma.reshape(1, D), beta.reshape(1, D)]
    in_specs += [pl.BlockSpec((1, D), lambda i: (0, 0)),
                 pl.BlockSpec((1, D), lambda i: (0, 0))]

    out = pl.pallas_call(
        functools.partial(_add_layernorm_kernel, has_residual=has_residual),
        out_shape=jax.ShapeDtypeStruct((Mp, D), jnp.float32),
        grid=(Mp // bm,),
        in_specs=in_specs,
        out_specs=pl.BlockSpec((bm, D), lambda i: (i, 0)),
        compiler_params=pltpu.CompilerParams(dimension_semantics=("parallel",)),
    )(*inputs)
    return out[:M].reshape(shp)


def _attention_kernel(*refs, n_heads, scale, causal):
    if causal:
        q_ref, k_ref, v_ref, o_ref = refs
        m_ref = None
    else:
        q_ref, k_ref, v_ref, m_ref, o_ref = refs
    Tq, D = q_ref.shape[1], q_ref.shape[2]
    Tk = k_ref.shape[1]
    dh = D // n_heads

    q = q_ref[0]
    k = k_ref[0]
    v = v_ref[0]

    if causal:
        rows = jax.lax.broadcasted_iota(jnp.int32, (Tq, Tk), 0)
        cols = jax.lax.broadcasted_iota(jnp.int32, (Tq, Tk), 1)
        bias = jnp.where(rows >= cols, 0.0, NEG_INF).astype(jnp.float32)
    else:
        bias = jnp.where(m_ref[0] != 0.0, 0.0, NEG_INF).astype(jnp.float32)  # (1,Tk)

    outs = []
    for h in range(n_heads):          # heads sliced in-kernel: lane-dense I/O blocks
        sl = slice(h * dh, (h + 1) * dh)
        s = jax.lax.dot_general(q[:, sl], k[:, sl], (((1,), (1,)), ((), ())),
                                preferred_element_type=jnp.float32)
        s = s * scale + bias
        m = jnp.max(s, axis=-1, keepdims=True)
        p = jnp.exp(s - m)
        p = p * pl.reciprocal(jnp.sum(p, axis=-1, keepdims=True), approx=True)
        outs.append(jnp.dot(p.astype(v.dtype), v[:, sl],
                            preferred_element_type=jnp.float32))
    o_ref[0] = jnp.concatenate(outs, axis=-1).astype(o_ref.dtype)


def attention_core(q, k, v, *, n_heads, causal, mask=None, compute_dtype=None):
    """q: [B,Tq,D], k/v: [B,Tk,D], mask (non-causal): [B,1,Tk] (0 = masked)."""
    B, Tq, D = q.shape
    Tk = k.shape[1]
    scale = 1.0 / math.sqrt(D // n_heads)
    cdt = compute_dtype or q.dtype

    inputs = [q.astype(cdt), k.astype(cdt), v.astype(cdt)]
    in_specs = [pl.BlockSpec((1, Tq, D), lambda b: (b, 0, 0)),
                pl.BlockSpec((1, Tk, D), lambda b: (b, 0, 0)),
                pl.BlockSpec((1, Tk, D), lambda b: (b, 0, 0))]
    if not causal:
        inputs.append(mask.astype(jnp.float32))
        in_specs.append(pl.BlockSpec((1, 1, Tk), lambda b: (b, 0, 0)))

    return pl.pallas_call(
        functools.partial(_attention_kernel, n_heads=n_heads, scale=scale,
                          causal=causal),
        out_shape=jax.ShapeDtypeStruct((B, Tq, D), jnp.float32),
        grid=(B,),
        in_specs=in_specs,
        out_specs=pl.BlockSpec((1, Tq, D), lambda b: (b, 0, 0)),
        compiler_params=pltpu.CompilerParams(dimension_semantics=("parallel",)),
    )(*inputs)


# --------------------------- Model forward (glue) ---------------------------

def multi_head_self_attention(p, x, n_heads, cdt):
    B, T, D = x.shape
    wqkv = jnp.concatenate([p["wq"], p["wk"], p["wv"]], axis=1)     # [D, 3D]
    bqkv = jnp.concatenate([p["bq"], p["bk"], p["bv"]], axis=0)
    qkv = linear(x.reshape(B * T, D), wqkv, bqkv, compute_dtype=cdt)
    q = qkv[:, :D].reshape(B, T, D)
    k = qkv[:, D:2 * D].reshape(B, T, D)
    v = qkv[:, 2 * D:].reshape(B, T, D)
    out = attention_core(q, k, v, n_heads=n_heads, causal=True,
                         compute_dtype=cdt)
    out = linear(out.reshape(B * T, D), p["wo"], p["bo"], compute_dtype=cdt)
    return out.reshape(B, T, D)


def multi_head_enc_attention(p, x, enc_out, enc_mask3, n_heads, cdt):
    B, Tq, D = x.shape
    Tk = enc_out.shape[1]
    q = linear(x.reshape(B * Tq, D), p["wq"], p["bq"],
               compute_dtype=cdt).reshape(B, Tq, D)
    wkv = jnp.concatenate([p["wk"], p["wv"]], axis=1)               # [D, 2D]
    bkv = jnp.concatenate([p["bk"], p["bv"]], axis=0)
    kv = linear(enc_out.reshape(B * Tk, D), wkv, bkv, compute_dtype=cdt)
    k = kv[:, :D].reshape(B, Tk, D)
    v = kv[:, D:].reshape(B, Tk, D)
    out = attention_core(q, k, v, n_heads=n_heads, causal=False,
                         mask=enc_mask3, compute_dtype=cdt)
    out = linear(out.reshape(B * Tq, D), p["wo"], p["bo"], compute_dtype=cdt)
    return out.reshape(B, Tq, D)


def decoder_layer(p, x, enc_out, enc_mask3, latent, ctr, n_heads, cdt):
    B, T, D = x.shape

    residual = x
    attn = multi_head_self_attention(p["self_attn"], x, n_heads, cdt)
    x = add_layer_norm(attn, residual, p["norm1_g"], p["norm1_b"])

    residual = x
    attn = multi_head_enc_attention(p["enc_attn"], x, enc_out, enc_mask3,
                                    n_heads, cdt)
    x = add_layer_norm(attn, residual, p["norm2_g"], p["norm2_b"])

    residual = x
    h = linear(x.reshape(B * T, D), p["ffn_w1"], p["ffn_b1"],
               activation="relu", compute_dtype=cdt)
    h = linear(h, p["ffn_w2"], p["ffn_b2"], compute_dtype=cdt).reshape(B, T, D)
    x = add_layer_norm(h, residual, p["norm3_g"], p["norm3_b"])

    # modulate (element == 'D'): tiny [B, C]-sized matmuls -> plain JAX
    # (each pallas_call launch would dwarf the work on (8,128)-padded tiles).
    bmod = jnp.maximum(jnp.dot(ctr, p["mod_w1"]) + p["mod_b1"], 0.0)
    bmod = jnp.dot(bmod, p["mod_w2"])                               # no bias
    x = x + bmod[:, None, :]

    L = latent.shape[-1]
    lat = jnp.broadcast_to(latent[:, None, :], (B, T, L))
    xc = jnp.concatenate([x, lat], axis=-1)
    x = linear(xc.reshape(B * T, D + L), p["comb_w"], p["comb_b"],
               compute_dtype=cdt).reshape(B, T, D)
    x = add_layer_norm(x, None, p["norm4_g"], p["norm4_b"])
    return x


def transformer_decoder_forward(params, tokens, enc_out, enc_mask, latent, ctr,
                                cfg, compute_dtype=None):
    B, T = tokens.shape
    E, D = cfg["embedding_size"], cfg["d_model"]
    cdt = compute_dtype or jnp.float32

    emb = jnp.take(params["tok_emb"], tokens, axis=0)               # [B,T,E]
    x = linear(emb.reshape(B * T, E), params["in_w"],
               compute_dtype=cdt).reshape(B, T, D)
    x = x * math.sqrt(E)                                            # embeddings_scale
    x = x + params["pos_emb"][:T][None]
    x = x + params["turn_emb"][0][None, None, :]                    # turn_embeddings(0)
    x = x + params["role_emb"][1][None, None, :]                    # role_embeddings(1)

    # hoisted once per forward pass (not per layer / per head)
    enc_mask3 = enc_mask.astype(jnp.float32).reshape(B, 1, -1)

    for lp in params["layers"]:
        x = decoder_layer(lp, x, enc_out, enc_mask3, latent, ctr,
                          cfg["n_heads"], cdt)

    # modulate=True => o2e is a plain Linear(d_model -> embedding_size)
    out = linear(x.reshape(B * T, D), params["o2e_w"], params["o2e_b"],
                 compute_dtype=cdt).reshape(B, T, E)
    return out


# ------------------------------- Parameters --------------------------------

def create_position_codes(n_pos, dim):
    pe = np.array([[pos / np.power(10000.0, 2 * (j // 2) / dim) for j in range(dim)]
                   for pos in range(n_pos)], dtype=np.float64)
    out = np.zeros((n_pos, dim), dtype=np.float32)
    out[:, 0::2] = np.sin(pe[:, 0::2])
    out[:, 1::2] = np.cos(pe[:, 1::2])
    return jnp.asarray(out)


def xavier(key, fan_in, fan_out):
    std = math.sqrt(2.0 / (fan_in + fan_out))
    return (std * jax.random.normal(key, (fan_in, fan_out))).astype(jnp.float32)


def small(key, shape, scale=0.02):
    return (scale * jax.random.normal(key, shape)).astype(jnp.float32)


def init_attention_params(key, D):
    ks = jax.random.split(key, 8)
    return dict(
        wq=xavier(ks[0], D, D), bq=small(ks[1], (D,)),
        wk=xavier(ks[2], D, D), bk=small(ks[3], (D,)),
        wv=xavier(ks[4], D, D), bv=small(ks[5], (D,)),
        wo=xavier(ks[6], D, D), bo=small(ks[7], (D,)),
    )


def init_layer_params(key, cfg):
    D, F = cfg["d_model"], cfg["ffn_size"]
    C, L = cfg["control_embedding"], cfg["latentsize"]
    ks = jax.random.split(key, 11)
    p = dict(
        self_attn=init_attention_params(ks[0], D),
        enc_attn=init_attention_params(ks[1], D),
        ffn_w1=xavier(ks[2], D, F), ffn_b1=small(ks[3], (F,)),
        ffn_w2=xavier(ks[4], F, D), ffn_b2=small(ks[5], (D,)),
        mod_w1=xavier(ks[6], C, D // 2), mod_b1=small(ks[7], (D // 2,)),
        mod_w2=xavier(ks[8], D // 2, D),                      # ModulateNetwork: no bias
        comb_w=xavier(ks[9], D + L, D), comb_b=small(ks[10], (D,)),
    )
    for n in ("norm1", "norm2", "norm3", "norm4"):
        p[n + "_g"] = jnp.ones((D,), jnp.float32)
        p[n + "_b"] = jnp.zeros((D,), jnp.float32)
    return p


def init_decoder_params(key, cfg):
    E, D = cfg["embedding_size"], cfg["d_model"]
    V, P = cfg["vocab"], cfg["n_positions"]
    ks = jax.random.split(key, 7)
    layers = [init_layer_params(lk, cfg)
              for lk in jax.random.split(ks[0], cfg["n_layers"])]
    return dict(
        tok_emb=(0.1 * jax.random.normal(ks[1], (V, E))).astype(jnp.float32),
        pos_emb=create_position_codes(P, D),
        turn_emb=(0.1 * jax.random.normal(ks[2], (4, D))).astype(jnp.float32),
        role_emb=(0.1 * jax.random.normal(ks[3], (4, D))).astype(jnp.float32),
        in_w=xavier(ks[4], E, D),
        o2e_w=xavier(ks[5], D, E), o2e_b=small(ks[6], (E,)),
        layers=layers,
    )


# ------------------------- Pure-JAX reference check -------------------------

def _ref_linear(x, w, b=None, activation=None):
    y = jnp.dot(x, w, precision=jax.lax.Precision.HIGHEST)
    if b is not None:
        y = y + b
    if activation == "relu":
        y = jnp.maximum(y, 0.0)
    return y


def _ref_layernorm(x, g, b):
    m = jnp.mean(x, -1, keepdims=True)
    v = jnp.mean((x - m) ** 2, -1, keepdims=True)
    return (x - m) / jnp.sqrt(v + LAYER_NORM_EPS) * g + b


def _ref_mha(p, q_in, k_in, v_in, mask, H):
    B, Tq, D = q_in.shape
    Tk = k_in.shape[1]
    dh = D // H
    q = _ref_linear(q_in, p["wq"], p["bq"]).reshape(B, Tq, H, dh).transpose(0, 2, 1, 3)
    k = _ref_linear(k_in, p["wk"], p["bk"]).reshape(B, Tk, H, dh).transpose(0, 2, 1, 3)
    v = _ref_linear(v_in, p["wv"], p["bv"]).reshape(B, Tk, H, dh).transpose(0, 2, 1, 3)
    s = jnp.einsum("bhqd,bhkd->bhqk", q / math.sqrt(dh), k,
                   precision=jax.lax.Precision.HIGHEST)
    if mask.ndim == 2:
        m3 = jnp.broadcast_to(mask[:, None, :], (B, Tq, Tk))
    else:
        m3 = mask
    s = s + jnp.where(m3[:, None] == 0, NEG_INF, 0.0)
    pa = jax.nn.softmax(s, axis=-1)
    o = jnp.einsum("bhqk,bhkd->bhqd", pa, v, precision=jax.lax.Precision.HIGHEST)
    o = o.transpose(0, 2, 1, 3).reshape(B, Tq, D)
    return _ref_linear(o, p["wo"], p["bo"])


def ref_decoder_layer(p, x, enc_out, enc_mask, latent, ctr, H):
    B, T, D = x.shape
    causal = jnp.broadcast_to(jnp.tril(jnp.ones((T, T), jnp.float32))[None], (B, T, T))
    x = _ref_layernorm(x + _ref_mha(p["self_attn"], x, x, x, causal, H),
                       p["norm1_g"], p["norm1_b"])
    x = _ref_layernorm(x + _ref_mha(p["enc_attn"], x, enc_out, enc_out, enc_mask, H),
                       p["norm2_g"], p["norm2_b"])
    h = _ref_linear(_ref_linear(x, p["ffn_w1"], p["ffn_b1"], "relu"),
                    p["ffn_w2"], p["ffn_b2"])
    x = _ref_layernorm(x + h, p["norm3_g"], p["norm3_b"])
    bmod = _ref_linear(_ref_linear(ctr, p["mod_w1"], p["mod_b1"], "relu"), p["mod_w2"])
    x = x + bmod[:, None, :]
    lat = jnp.broadcast_to(latent[:, None, :], (B, T, latent.shape[-1]))
    x = _ref_linear(jnp.concatenate([x, lat], -1), p["comb_w"], p["comb_b"])
    return _ref_layernorm(x, p["norm4_g"], p["norm4_b"])


def ref_decoder_forward(params, tokens, enc_out, enc_mask, latent, ctr, cfg):
    B, T = tokens.shape
    E = cfg["embedding_size"]
    emb = jnp.take(params["tok_emb"], tokens, axis=0)
    x = _ref_linear(emb, params["in_w"]) * math.sqrt(E)
    x = x + params["pos_emb"][:T][None]
    x = x + params["turn_emb"][0][None, None, :]
    x = x + params["role_emb"][1][None, None, :]
    for lp in params["layers"]:
        x = ref_decoder_layer(lp, x, enc_out, enc_mask, latent, ctr, cfg["n_heads"])
    return _ref_linear(x, params["o2e_w"], params["o2e_b"])


# ---------------------------------- main ------------------------------------

if __name__ == "__main__":
    cfg = dict(embedding_size=16, d_model=32, ffn_size=64, n_heads=2, n_layers=2,
               vocab=50, n_positions=16, latentsize=8, control_embedding=8)

    key = jax.random.PRNGKey(0)
    kp, kt, ke, kl, kc = jax.random.split(key, 5)
    params = init_decoder_params(kp, cfg)

    B, T, Senc = 2, 8, 12
    tokens = jax.random.randint(kt, (B, T), 0, cfg["vocab"], dtype=jnp.int32)
    enc_out = jax.random.normal(ke, (B, Senc, cfg["d_model"]), jnp.float32)
    enc_mask = jnp.ones((B, Senc), jnp.float32).at[1, 9:].set(0.0)
    latent = jax.random.normal(kl, (B, cfg["latentsize"]), jnp.float32)
    ctr = jax.random.normal(kc, (B, cfg["control_embedding"]), jnp.float32)

    # f32 operands: checked against the pure-JAX reference.
    fwd_f32 = jax.jit(functools.partial(transformer_decoder_forward, cfg=cfg))
    out = jax.block_until_ready(fwd_f32(params, tokens, enc_out, enc_mask, latent, ctr))
    assert out.shape == (B, T, cfg["embedding_size"])
    assert bool(jnp.all(jnp.isfinite(out)))

    ref = ref_decoder_forward(params, tokens, enc_out, enc_mask, latent, ctr, cfg)
    assert bool(jnp.allclose(out, ref, rtol=2e-2, atol=2e-2)), "mismatch vs JAX reference"

    # bf16 matmul operands / f32 accumulation path (v6e/v7x MXU peak): sanity run.
    fwd_bf16 = jax.jit(functools.partial(transformer_decoder_forward, cfg=cfg,
                                         compute_dtype=jnp.bfloat16))
    out_bf16 = jax.block_until_ready(
        fwd_bf16(params, tokens, enc_out, enc_mask, latent, ctr))
    assert out_bf16.shape == (B, T, cfg["embedding_size"])
    assert bool(jnp.all(jnp.isfinite(out_bf16)))

    print("KERNEL_OK")
</pallas_src>

<mosaic_0001>
module attributes {stable_mosaic.version = 11 : i64} {
  func.func @_linear_kernel(%arg0: i32, %arg1: i32, %arg2: i32, %arg3: memref<16x128xf32, #tpu.memory_space<vmem>>, %arg4: memref<128x128xf32, #tpu.memory_space<vmem>>, %arg5: memref<16x128xf32, #tpu.memory_space<vmem>>, %arg6: memref<16x128xf32, #tpu.memory_space<vmem>>) attributes {dimension_semantics = [#tpu.dimension_semantics<parallel>, #tpu.dimension_semantics<parallel>, #tpu.dimension_semantics<arbitrary>], iteration_bounds = array<i64: 1, 1, 1>, scalar_prefetch = 0 : i64, scratch_operands = 1 : i64, tpu.core_type = #tpu.core_type<tc>, window_params = [{transform_indices = @transform_0, window_bounds = array<i64: 16, 128>}, {transform_indices = @transform_1, window_bounds = array<i64: 128, 128>}, {transform_indices = @transform_2, window_bounds = array<i64: 16, 128>}]} {
    %c0_i32 = arith.constant 0 : i32
    %0 = arith.cmpi eq, %arg2, %c0_i32 : i32
    %1 = arith.extui %0 : i1 to i32
    %c0_i32_0 = arith.constant 0 : i32
    %2 = arith.cmpi ne, %1, %c0_i32_0 : i32
    scf.if %2 {
      %cst_10 = arith.constant 0.000000e+00 : f32
      %12 = vector.broadcast %cst_10 : f32 to vector<16x128xf32>
      %c0_11 = arith.constant 0 : index
      %c0_12 = arith.constant 0 : index
      %13 = vector.load %arg6[%c0_11, %c0_12] : memref<16x128xf32, #tpu.memory_space<vmem>>, vector<16x128xf32>
      tpu.vector_store %arg6[%c0_11, %c0_12], %12 {strides = array<i32>} : memref<16x128xf32, #tpu.memory_space<vmem>>, vector<16x128xf32>,
    } else {
    }
    %c0 = arith.constant 0 : index
    %c0_1 = arith.constant 0 : index
    %3 = vector.load %arg6[%c0, %c0_1] : memref<16x128xf32, #tpu.memory_space<vmem>>, vector<16x128xf32>
    %c0_2 = arith.constant 0 : index
    %c0_3 = arith.constant 0 : index
    %4 = vector.load %arg3[%c0_2, %c0_3] : memref<16x128xf32, #tpu.memory_space<vmem>>, vector<16x128xf32>
    %c0_4 = arith.constant 0 : index
    %c0_5 = arith.constant 0 : index
    %5 = vector.load %arg4[%c0_4, %c0_5] : memref<128x128xf32, #tpu.memory_space<vmem>>, vector<128x128xf32>
    %cst = arith.constant dense<0.000000e+00> : vector<16x128xf32>
    %6 = tpu.matmul %4, %5, %cst {dimension_numbers = #tpu.dot_dimension_numbers<[1], [0], [0], [1], [0, 0, 1, 1], [], []>} : vector<16x128xf32>, vector<128x128xf32>, vector<16x128xf32> -> vector<16x128xf32>
    %7 = arith.addf %3, %6 : vector<16x128xf32>
    %c0_6 = arith.constant 0 : index
    %c0_7 = arith.constant 0 : index
    %8 = vector.load %arg6[%c0_6, %c0_7] : memref<16x128xf32, #tpu.memory_space<vmem>>, vector<16x128xf32>
    tpu.vector_store %arg6[%c0_6, %c0_7], %7 {strides = array<i32>} : memref<16x128xf32, #tpu.memory_space<vmem>>, vector<16x128xf32>,
    %c0_i32_8 = arith.constant 0 : i32
    %9 = arith.cmpi eq, %arg2, %c0_i32_8 : i32
    %10 = arith.extui %9 : i1 to i32
    %c0_i32_9 = arith.constant 0 : i32
    %11 = arith.cmpi ne, %10, %c0_i32_9 : i32
    scf.if %11 {
      %c0_10 = arith.constant 0 : index
      %c0_11 = arith.constant 0 : index
      %12 = vector.load %arg6[%c0_10, %c0_11] : memref<16x128xf32, #tpu.memory_space<vmem>>, vector<16x128xf32>
      %c0_12 = arith.constant 0 : index
      %c0_13 = arith.constant 0 : index
      %13 = vector.load %arg5[%c0_12, %c0_13] : memref<16x128xf32, #tpu.memory_space<vmem>>, vector<16x128xf32>
      tpu.vector_store %arg5[%c0_12, %c0_13], %12 {strides = array<i32>} : memref<16x128xf32, #tpu.memory_space<vmem>>, vector<16x128xf32>,
    } else {
    }
    return
  }
  func.func @transform_0(%arg0: i32, %arg1: i32, %arg2: i32) -> (i32, i32) {
    %c0_i32 = arith.constant 0 : i32
    return %arg0, %arg2 : i32, i32
  }
  func.func @transform_1(%arg0: i32, %arg1: i32, %arg2: i32) -> (i32, i32) {
    %c0_i32 = arith.constant 0 : i32
    return %arg2, %arg1 : i32, i32
  }
  func.func @transform_2(%arg0: i32, %arg1: i32, %arg2: i32) -> (i32, i32) {
    %c0_i32 = arith.constant 0 : i32
    return %arg0, %arg1 : i32, i32
  }
}

module attributes {stable_mosaic.version = 11 : i64} {
  func.func @_linear_kernel(%arg0: i32, %arg1: i32, %arg2: i32, %arg3: memref<16x128xf32, #tpu.memory_space<vmem>>, %arg4: memref<128x128xf32, #tpu.memory_space<vmem>>, %arg5: memref<1x128xf32, #tpu.memory_space<vmem>>, %arg6: memref<16x128xf32, #tpu.memory_space<vmem>>, %arg7: memref<16x128xf32, #tpu.memory_space<vmem>>) attributes {dimension_semantics = [#tpu.dimension_semantics<parallel>, #tpu.dimension_semantics<parallel>, #tpu.dimension_semantics<arbitrary>], iteration_bounds = array<i64: 1, 1, 1>, scalar_prefetch = 0 : i64, scratch_operands = 1 : i64, tpu.core_type = #tpu.core_type<tc>, window_params = [{transform_indices = @transform_0, window_bounds = array<i64: 16, 128>}, {transform_indices = @transform_1, window_bounds = array<i64: 128, 128>}, {transform_indices = @transform_2, window_bounds = array<i64: 1, 128>}, {transform_indices = @transform_3, window_bounds = array<i64: 16, 128>}]} {
    %c0_i32 = arith.constant 0 : i32
    %0 = arith.cmpi eq, %arg2, %c0_i32 : i32
    %1 = arith.extui %0 : i1 to i32
    %c0_i32_0 = arith.constant 0 : i32
    %2 = arith.cmpi ne, %1, %c0_i32_0 : i32
    scf.if %2 {
      %cst_10 = arith.constant 0.000000e+00 : f32
      %12 = vector.broadcast %cst_10 : f32 to vector<16x128xf32>
      %c0_11 = arith.constant 0 : index
      %c0_12 = arith.constant 0 : index
      %13 = vector.load %arg7[%c0_11, %c0_12] : memref<16x128xf32, #tpu.memory_space<vmem>>, vector<16x128xf32>
      tpu.vector_store %arg7[%c0_11, %c0_12], %12 {strides = array<i32>} : memref<16x128xf32, #tpu.memory_space<vmem>>, vector<16x128xf32>,
    } else {
    }
    %c0 = arith.constant 0 : index
    %c0_1 = arith.constant 0 : index
    %3 = vector.load %arg7[%c0, %c0_1] : memref<16x128xf32, #tpu.memory_space<vmem>>, vector<16x128xf32>
    %c0_2 = arith.constant 0 : index
    %c0_3 = arith.constant 0 : index
    %4 = vector.load %arg3[%c0_2, %c0_3] : memref<16x128xf32, #tpu.memory_space<vmem>>, vector<16x128xf32>
    %c0_4 = arith.constant 0 : index
    %c0_5 = arith.constant 0 : index
    %5 = vector.load %arg4[%c0_4, %c0_5] : memref<128x128xf32, #tpu.memory_space<vmem>>, vector<128x128xf32>
    %cst = arith.constant dense<0.000000e+00> : vector<16x128xf32>
    %6 = tpu.matmul %4, %5, %cst {dimension_numbers = #tpu.dot_dimension_numbers<[1], [0], [0], [1], [0, 0, 1, 1], [], []>} : vector<16x128xf32>, vector<128x128xf32>, vector<16x128xf32> -> vector<16x128xf32>
    %7 = arith.addf %3, %6 : vector<16x128xf32>
    %c0_6 = arith.constant 0 : index
    %c0_7 = arith.constant 0 : index
    %8 = vector.load %arg7[%c0_6, %c0_7] : memref<16x128xf32, #tpu.memory_space<vmem>>, vector<16x128xf32>
    tpu.vector_store %arg7[%c0_6, %c0_7], %7 {strides = array<i32>} : memref<16x128xf32, #tpu.memory_space<vmem>>, vector<16x128xf32>,
    %c0_i32_8 = arith.constant 0 : i32
    %9 = arith.cmpi eq, %arg2, %c0_i32_8 : i32
    %10 = arith.extui %9 : i1 to i32
    %c0_i32_9 = arith.constant 0 : i32
    %11 = arith.cmpi ne, %10, %c0_i32_9 : i32
    scf.if %11 {
      %c0_10 = arith.constant 0 : index
      %c0_11 = arith.constant 0 : index
      %12 = vector.load %arg7[%c0_10, %c0_11] : memref<16x128xf32, #tpu.memory_space<vmem>>, vector<16x128xf32>
      %c0_12 = arith.constant 0 : index
      %c0_13 = arith.constant 0 : index
      %13 = vector.load %arg5[%c0_12, %c0_13] : memref<1x128xf32, #tpu.memory_space<vmem>>, vector<1x128xf32>
      %14 = vector.broadcast %13 : vector<1x128xf32> to vector<16x128xf32>
      %15 = arith.addf %12, %14 : vector<16x128xf32>
      %c0_14 = arith.constant 0 : index
      %c0_15 = arith.constant 0 : index
      %16 = vector.load %arg6[%c0_14, %c0_15] : memref<16x128xf32, #tpu.memory_space<vmem>>, vector<16x128xf32>
      tpu.vector_store %arg6[%c0_14, %c0_15], %15 {strides = array<i32>} : memref<16x128xf32, #tpu.memory_space<vmem>>, vector<16x128xf32>,
    } else {
    }
    return
  }
  func.func @transform_0(%arg0: i32, %arg1: i32, %arg2: i32) -> (i32, i32) {
    %c0_i32 = arith.constant 0 : i32
    return %arg0, %arg2 : i32, i32
  }
  func.func @transform_1(%arg0: i32, %arg1: i32, %arg2: i32) -> (i32, i32) {
    %c0_i32 = arith.constant 0 : i32
    return %arg2, %arg1 : i32, i32
  }
  func.func @transform_2(%arg0: i32, %arg1: i32, %arg2: i32) -> (i32, i32) {
    %c0_i32 = arith.constant 0 : i32
    %c0_i32_0 = arith.constant 0 : i32
    return %c0_i32, %arg1 : i32, i32
  }
  func.func @transform_3(%arg0: i32, %arg1: i32, %arg2: i32) -> (i32, i32) {
    %c0_i32 = arith.constant 0 : i32
    return %arg0, %arg1 : i32, i32
  }
}

module attributes {stable_mosaic.version = 11 : i64} {
  func.func @_attention_kernel(%arg0: i32, %arg1: memref<1x8x32xf32, #tpu.memory_space<vmem>>, %arg2: memref<1x8x32xf32, #tpu.memory_space<vmem>>, %arg3: memref<1x8x32xf32, #tpu.memory_space<vmem>>, %arg4: memref<1x8x32xf32, #tpu.memory_space<vmem>>) attributes {dimension_semantics = [#tpu.dimension_semantics<parallel>], iteration_bounds = array<i64: 2>, scalar_prefetch = 0 : i64, scratch_operands = 0 : i64, tpu.core_type = #tpu.core_type<tc>, window_params = [{transform_indices = @transform_0, window_bounds = array<i64: 1, 8, 32>}, {transform_indices = @transform_1, window_bounds = array<i64: 1, 8, 32>}, {transform_indices = @transform_2, window_bounds = array<i64: 1, 8, 32>}, {transform_indices = @transform_3, window_bounds = array<i64: 1, 8, 32>}]} {
    %c0 = arith.constant 0 : index
    %c0_0 = arith.constant 0 : index
    %c0_1 = arith.constant 0 : index
    %0 = vector.load %arg1[%c0, %c0_0, %c0_1] : memref<1x8x32xf32, #tpu.memory_space<vmem>>, vector<1x8x32xf32>
    %1 = vector.shape_cast %0 : vector<1x8x32xf32> to vector<8x32xf32>
    %c0_2 = arith.constant 0 : index
    %c0_3 = arith.constant 0 : index
    %c0_4 = arith.constant 0 : index
    %2 = vector.load %arg2[%c0_2, %c0_3, %c0_4] : memref<1x8x32xf32, #tpu.memory_space<vmem>>, vector<1x8x32xf32>
    %3 = vector.shape_cast %2 : vector<1x8x32xf32> to vector<8x32xf32>
    %c0_5 = arith.constant 0 : index
    %c0_6 = arith.constant 0 : index
    %c0_7 = arith.constant 0 : index
    %4 = vector.load %arg3[%c0_5, %c0_6, %c0_7] : memref<1x8x32xf32, #tpu.memory_space<vmem>>, vector<1x8x32xf32>
    %5 = vector.shape_cast %4 : vector<1x8x32xf32> to vector<8x32xf32>
    %6 = tpu.iota {dimensions = array<i32: 0>} : vector<8x8xi32>
    %7 = tpu.iota {dimensions = array<i32: 1>} : vector<8x8xi32>
    %8 = arith.cmpi sge, %6, %7 : vector<8x8xi32>
    %cst = arith.constant 0.000000e+00 : f32
    %cst_8 = arith.constant -1.000000e+09 : f32
    %9 = vector.broadcast %cst : f32 to vector<8x8xf32>
    %10 = vector.broadcast %cst_8 : f32 to vector<8x8xf32>
    %11 = arith.select %8, %9, %10 : vector<8x8xi1>, vector<8x8xf32>
    %12 = vector.extract_strided_slice %1 {offsets = [0, 0], sizes = [8, 16], strides = [1, 1]} : vector<8x32xf32> to vector<8x16xf32>
    %13 = vector.extract_strided_slice %3 {offsets = [0, 0], sizes = [8, 16], strides = [1, 1]} : vector<8x32xf32> to vector<8x16xf32>
    %cst_9 = arith.constant dense<0.000000e+00> : vector<8x8xf32>
    %14 = tpu.matmul %12, %13, %cst_9 {dimension_numbers = #tpu.dot_dimension_numbers<[1], [1], [0], [0], [0, 0, 1, 0], [], []>} : vector<8x16xf32>, vector<8x16xf32>, vector<8x8xf32> -> vector<8x8xf32>
    %cst_10 = arith.constant 2.500000e-01 : f32
    %15 = vector.broadcast %cst_10 : f32 to vector<8x8xf32>
    %16 = arith.mulf %14, %15 : vector<8x8xf32>
    %17 = arith.addf %16, %11 : vector<8x8xf32>
    %cst_11 = arith.constant dense<0xFF800000> : vector<8xf32>
    %18 = vector.multi_reduction <maximumf>, %17, %cst_11 [1] : vector<8x8xf32> to vector<8xf32>
    %19 = vector.shape_cast %18 : vector<8xf32> to vector<8x1xf32>
    %20 = vector.broadcast %19 : vector<8x1xf32> to vector<8x8xf32>
    %21 = arith.subf %17, %20 : vector<8x8xf32>
    %22 = math.exp %21 : vector<8x8xf32>
    %cst_12 = arith.constant dense<0.000000e+00> : vector<8xf32>
    %23 = vector.multi_reduction <add>, %22, %cst_12 [1] : vector<8x8xf32> to vector<8xf32>
    %24 = vector.shape_cast %23 : vector<8xf32> to vector<8x1xf32>
    %25 = tpu.reciprocal %24 {approx = true} : vector<8x1xf32> -> vector<8x1xf32>
    %26 = vector.broadcast %25 : vector<8x1xf32> to vector<8x8xf32>
    %27 = arith.mulf %22, %26 : vector<8x8xf32>
    %28 = vector.extract_strided_slice %5 {offsets = [0, 0], sizes = [8, 16], strides = [1, 1]} : vector<8x32xf32> to vector<8x16xf32>
    %cst_13 = arith.constant dense<0.000000e+00> : vector<8x16xf32>
    %29 = tpu.matmul %27, %28, %cst_13 {dimension_numbers = #tpu.dot_dimension_numbers<[1], [0], [0], [1], [0, 0, 1, 1], [], []>} : vector<8x8xf32>, vector<8x16xf32>, vector<8x16xf32> -> vector<8x16xf32>
    %30 = vector.extract_strided_slice %1 {offsets = [0, 16], sizes = [8, 16], strides = [1, 1]} : vector<8x32xf32> to vector<8x16xf32>
    %31 = vector.extract_strided_slice %3 {offsets = [0, 16], sizes = [8, 16], strides = [1, 1]} : vector<8x32xf32> to vector<8x16xf32>
    %cst_14 = arith.constant dense<0.000000e+00> : vector<8x8xf32>
    %32 = tpu.matmul %30, %31, %cst_14 {dimension_numbers = #tpu.dot_dimension_numbers<[1], [1], [0], [0], [0, 0, 1, 0], [], []>} : vector<8x16xf32>, vector<8x16xf32>, vector<8x8xf32> -> vector<8x8xf32>
    %cst_15 = arith.constant 2.500000e-01 : f32
    %33 = vector.broadcast %cst_15 : f32 to vector<8x8xf32>
    %34 = arith.mulf %32, %33 : vector<8x8xf32>
    %35 = arith.addf %34, %11 : vector<8x8xf32>
    %cst_16 = arith.constant dense<0xFF800000> : vector<8xf32>
    %36 = vector.multi_reduction <maximumf>, %35, %cst_16 [1] : vector<8x8xf32> to vector<8xf32>
    %37 = vector.shape_cast %36 : vector<8xf32> to vector<8x1xf32>
    %38 = vector.broadcast %37 : vector<8x1xf32> to vector<8x8xf32>
    %39 = arith.subf %35, %38 : vector<8x8xf32>
    %40 = math.exp %39 : vector<8x8xf32>
    %cst_17 = arith.constant dense<0.000000e+00> : vector<8xf32>
    %41 = vector.multi_reduction <add>, %40, %cst_17 [1] : vector<8x8xf32> to vector<8xf32>
    %42 = vector.shape_cast %41 : vector<8xf32> to vector<8x1xf32>
    %43 = tpu.reciprocal %42 {approx = true} : vector<8x1xf32> -> vector<8x1xf32>
    %44 = vector.broadcast %43 : vector<8x1xf32> to vector<8x8xf32>
    %45 = arith.mulf %40, %44 : vector<8x8xf32>
    %46 = vector.extract_strided_slice %5 {offsets = [0, 16], sizes = [8, 16], strides = [1, 1]} : vector<8x32xf32> to vector<8x16xf32>
    %cst_18 = arith.constant dense<0.000000e+00> : vector<8x16xf32>
    %47 = tpu.matmul %45, %46, %cst_18 {dimension_numbers = #tpu.dot_dimension_numbers<[1], [0], [0], [1], [0, 0, 1, 1], [], []>} : vector<8x8xf32>, vector<8x16xf32>, vector<8x16xf32> -> vector<8x16xf32>
    %48 = tpu.concatenate %29, %47 in 1 : vector<8x16xf32>, vector<8x16xf32> -> vector<8x32xf32>
    %c0_19 = arith.constant 0 : index
    %c0_20 = arith.constant 0 : index
    %c0_21 = arith.constant 0 : index
    %49 = vector.load %arg4[%c0_19, %c0_20, %c0_21] : memref<1x8x32xf32, #tpu.memory_space<vmem>>, vector<1x8x32xf32>
    %50 = vector.shape_cast %49 : vector<1x8x32xf32> to vector<8x32xf32>
    %51 = vector.shape_cast %48 : vector<8x32xf32> to vector<1x8x32xf32>
    tpu.vector_store %arg4[%c0_19, %c0_20, %c0_21], %51 {strides = array<i32>} : memref<1x8x32xf32, #tpu.memory_space<vmem>>, vector<1x8x32xf32>,
    return
  }
  func.func @transform_0(%arg0: i32) -> (i32, i32, i32) {
    %c0_i32 = arith.constant 0 : i32
    %c0_i32_0 = arith.constant 0 : i32
    %c0_i32_1 = arith.constant 0 : i32
    return %arg0, %c0_i32, %c0_i32_0 : i32, i32, i32
  }
  func.func @transform_1(%arg0: i32) -> (i32, i32, i32) {
    %c0_i32 = arith.constant 0 : i32
    %c0_i32_0 = arith.constant 0 : i32
    %c0_i32_1 = arith.constant 0 : i32
    return %arg0, %c0_i32, %c0_i32_0 : i32, i32, i32
  }
  func.func @transform_2(%arg0: i32) -> (i32, i32, i32) {
    %c0_i32 = arith.constant 0 : i32
    %c0_i32_0 = arith.constant 0 : i32
    %c0_i32_1 = arith.constant 0 : i32
    return %arg0, %c0_i32, %c0_i32_0 : i32, i32, i32
  }
  func.func @transform_3(%arg0: i32) -> (i32, i32, i32) {
    %c0_i32 = arith.constant 0 : i32
    %c0_i32_0 = arith.constant 0 : i32
    %c0_i32_1 = arith.constant 0 : i32
    return %arg0, %c0_i32, %c0_i32_0 : i32, i32, i32
  }
}

module attributes {stable_mosaic.version = 11 : i64} {
  func.func @_add_layernorm_kernel(%arg0: i32, %arg1: memref<16x32xf32, #tpu.memory_space<vmem>>, %arg2: memref<16x32xf32, #tpu.memory_space<vmem>>, %arg3: memref<1x32xf32, #tpu.memory_space<vmem>>, %arg4: memref<1x32xf32, #tpu.memory_space<vmem>>, %arg5: memref<16x32xf32, #tpu.memory_space<vmem>>) attributes {dimension_semantics = [#tpu.dimension_semantics<parallel>], iteration_bounds = array<i64: 1>, scalar_prefetch = 0 : i64, scratch_operands = 0 : i64, tpu.core_type = #tpu.core_type<tc>, window_params = [{transform_indices = @transform_0, window_bounds = array<i64: 16, 32>}, {transform_indices = @transform_1, window_bounds = array<i64: 16, 32>}, {pipeline_mode = #tpu.pipeline_mode<synchronous>, transform_indices = @transform_2, window_bounds = array<i64: 1, 32>}, {pipeline_mode = #tpu.pipeline_mode<synchronous>, transform_indices = @transform_3, window_bounds = array<i64: 1, 32>}, {transform_indices = @transform_4, window_bounds = array<i64: 16, 32>}]} {
    %c0 = arith.constant 0 : index
    %c0_0 = arith.constant 0 : index
    %0 = vector.load %arg1[%c0, %c0_0] : memref<16x32xf32, #tpu.memory_space<vmem>>, vector<16x32xf32>
    %c0_1 = arith.constant 0 : index
    %c0_2 = arith.constant 0 : index
    %1 = vector.load %arg2[%c0_1, %c0_2] : memref<16x32xf32, #tpu.memory_space<vmem>>, vector<16x32xf32>
    %2 = arith.addf %0, %1 : vector<16x32xf32>
    %cst = arith.constant dense<0.000000e+00> : vector<16xf32>
    %3 = vector.multi_reduction <add>, %2, %cst [1] : vector<16x32xf32> to vector<16xf32>
    %4 = vector.shape_cast %3 : vector<16xf32> to vector<16x1xf32>
    %cst_3 = arith.constant 3.200000e+01 : f32
    %5 = vector.broadcast %cst_3 : f32 to vector<16x1xf32>
    %6 = arith.divf %4, %5 : vector<16x1xf32>
    %7 = vector.broadcast %6 : vector<16x1xf32> to vector<16x32xf32>
    %8 = arith.subf %2, %7 : vector<16x32xf32>
    %9 = arith.mulf %8, %8 : vector<16x32xf32>
    %cst_4 = arith.constant dense<0.000000e+00> : vector<16xf32>
    %10 = vector.multi_reduction <add>, %9, %cst_4 [1] : vector<16x32xf32> to vector<16xf32>
    %11 = vector.shape_cast %10 : vector<16xf32> to vector<16x1xf32>
    %cst_5 = arith.constant 3.200000e+01 : f32
    %12 = vector.broadcast %cst_5 : f32 to vector<16x1xf32>
    %13 = arith.divf %11, %12 : vector<16x1xf32>
    %cst_6 = arith.constant 9.99999974E-6 : f32
    %14 = vector.broadcast %cst_6 : f32 to vector<16x1xf32>
    %15 = arith.addf %13, %14 : vector<16x1xf32>
    %16 = math.rsqrt %15 : vector<16x1xf32>
    %17 = vector.broadcast %16 : vector<16x1xf32> to vector<16x32xf32>
    %18 = arith.mulf %8, %17 : vector<16x32xf32>
    %c0_7 = arith.constant 0 : index
    %c0_8 = arith.constant 0 : index
    %19 = vector.load %arg3[%c0_7, %c0_8] : memref<1x32xf32, #tpu.memory_space<vmem>>, vector<1x32xf32>
    %20 = vector.broadcast %19 : vector<1x32xf32> to vector<16x32xf32>
    %21 = arith.mulf %18, %20 : vector<16x32xf32>
    %c0_9 = arith.constant 0 : index
    %c0_10 = arith.constant 0 : index
    %22 = vector.load %arg4[%c0_9, %c0_10] : memref<1x32xf32, #tpu.memory_space<vmem>>, vector<1x32xf32>
    %23 = vector.broadcast %22 : vector<1x32xf32> to vector<16x32xf32>
    %24 = arith.addf %21, %23 : vector<16x32xf32>
    %c0_11 = arith.constant 0 : index
    %c0_12 = arith.constant 0 : index
    %25 = vector.load %arg5[%c0_11, %c0_12] : memref<16x32xf32, #tpu.memory_space<vmem>>, vector<16x32xf32>
    tpu.vector_store %arg5[%c0_11, %c0_12], %24 {strides = array<i32>} : memref<16x32xf32, #tpu.memory_space<vmem>>, vector<16x32xf32>,
    return
  }
  func.func @transform_0(%arg0: i32) -> (i32, i32) {
    %c0_i32 = arith.constant 0 : i32
    %c0_i32_0 = arith.constant 0 : i32
    return %arg0, %c0_i32 : i32, i32
  }
  func.func @transform_1(%arg0: i32) -> (i32, i32) {
    %c0_i32 = arith.constant 0 : i32
    %c0_i32_0 = arith.constant 0 : i32
    return %arg0, %c0_i32 : i32, i32
  }
  func.func @transform_2(%arg0: i32) -> (i32, i32) {
    %c0_i32 = arith.constant 0 : i32
    %c0_i32_0 = arith.constant 0 : i32
    %c0_i32_1 = arith.constant 0 : i32
    return %c0_i32, %c0_i32_0 : i32, i32
  }
  func.func @transform_3(%arg0: i32) -> (i32, i32) {
    %c0_i32 = arith.constant 0 : i32
    %c0_i32_0 = arith.constant 0 : i32
    %c0_i32_1 = arith.constant 0 : i32
    return %c0_i32, %c0_i32_0 : i32, i32
  }
  func.func @transform_4(%arg0: i32) -> (i32, i32) {
    %c0_i32 = arith.constant 0 : i32
    %c0_i32_0 = arith.constant 0 : i32
    return %arg0, %c0_i32 : i32, i32
  }
}

module attributes {stable_mosaic.version = 11 : i64} {
  func.func @_linear_kernel(%arg0: i32, %arg1: i32, %arg2: i32, %arg3: memref<24x128xf32, #tpu.memory_space<vmem>>, %arg4: memref<128x128xf32, #tpu.memory_space<vmem>>, %arg5: memref<1x128xf32, #tpu.memory_space<vmem>>, %arg6: memref<24x128xf32, #tpu.memory_space<vmem>>, %arg7: memref<24x128xf32, #tpu.memory_space<vmem>>) attributes {dimension_semantics = [#tpu.dimension_semantics<parallel>, #tpu.dimension_semantics<parallel>, #tpu.dimension_semantics<arbitrary>], iteration_bounds = array<i64: 1, 1, 1>, scalar_prefetch = 0 : i64, scratch_operands = 1 : i64, tpu.core_type = #tpu.core_type<tc>, window_params = [{transform_indices = @transform_0, window_bounds = array<i64: 24, 128>}, {transform_indices = @transform_1, window_bounds = array<i64: 128, 128>}, {transform_indices = @transform_2, window_bounds = array<i64: 1, 128>}, {transform_indices = @transform_3, window_bounds = array<i64: 24, 128>}]} {
    %c0_i32 = arith.constant 0 : i32
    %0 = arith.cmpi eq, %arg2, %c0_i32 : i32
    %1 = arith.extui %0 : i1 to i32
    %c0_i32_0 = arith.constant 0 : i32
    %2 = arith.cmpi ne, %1, %c0_i32_0 : i32
    scf.if %2 {
      %cst_10 = arith.constant 0.000000e+00 : f32
      %12 = vector.broadcast %cst_10 : f32 to vector<24x128xf32>
      %c0_11 = arith.constant 0 : index
      %c0_12 = arith.constant 0 : index
      %13 = vector.load %arg7[%c0_11, %c0_12] : memref<24x128xf32, #tpu.memory_space<vmem>>, vector<24x128xf32>
      tpu.vector_store %arg7[%c0_11, %c0_12], %12 {strides = array<i32>} : memref<24x128xf32, #tpu.memory_space<vmem>>, vector<24x128xf32>,
    } else {
    }
    %c0 = arith.constant 0 : index
    %c0_1 = arith.constant 0 : index
    %3 = vector.load %arg7[%c0, %c0_1] : memref<24x128xf32, #tpu.memory_space<vmem>>, vector<24x128xf32>
    %c0_2 = arith.constant 0 : index
    %c0_3 = arith.constant 0 : index
    %4 = vector.load %arg3[%c0_2, %c0_3] : memref<24x128xf32, #tpu.memory_space<vmem>>, vector<24x128xf32>
    %c0_4 = arith.constant 0 : index
    %c0_5 = arith.constant 0 : index
    %5 = vector.load %arg4[%c0_4, %c0_5] : memref<128x128xf32, #tpu.memory_space<vmem>>, vector<128x128xf32>
    %cst = arith.constant dense<0.000000e+00> : vector<24x128xf32>
    %6 = tpu.matmul %4, %5, %cst {dimension_numbers = #tpu.dot_dimension_numbers<[1], [0], [0], [1], [0, 0, 1, 1], [], []>} : vector<24x128xf32>, vector<128x128xf32>, vector<24x128xf32> -> vector<24x128xf32>
    %7 = arith.addf %3, %6 : vector<24x128xf32>
    %c0_6 = arith.constant 0 : index
    %c0_7 = arith.constant 0 : index
    %8 = vector.load %arg7[%c0_6, %c0_7] : memref<24x128xf32, #tpu.memory_space<vmem>>, vector<24x128xf32>
    tpu.vector_store %arg7[%c0_6, %c0_7], %7 {strides = array<i32>} : memref<24x128xf32, #tpu.memory_space<vmem>>, vector<24x128xf32>,
    %c0_i32_8 = arith.constant 0 : i32
    %9 = arith.cmpi eq, %arg2, %c0_i32_8 : i32
    %10 = arith.extui %9 : i1 to i32
    %c0_i32_9 = arith.constant 0 : i32
    %11 = arith.cmpi ne, %10, %c0_i32_9 : i32
    scf.if %11 {
      %c0_10 = arith.constant 0 : index
      %c0_11 = arith.constant 0 : index
      %12 = vector.load %arg7[%c0_10, %c0_11] : memref<24x128xf32, #tpu.memory_space<vmem>>, vector<24x128xf32>
      %c0_12 = arith.constant 0 : index
      %c0_13 = arith.constant 0 : index
      %13 = vector.load %arg5[%c0_12, %c0_13] : memref<1x128xf32, #tpu.memory_space<vmem>>, vector<1x128xf32>
      %14 = vector.broadcast %13 : vector<1x128xf32> to vector<24x128xf32>
      %15 = arith.addf %12, %14 : vector<24x128xf32>
      %c0_14 = arith.constant 0 : index
      %c0_15 = arith.constant 0 : index
      %16 = vector.load %arg6[%c0_14, %c0_15] : memref<24x128xf32, #tpu.memory_space<vmem>>, vector<24x128xf32>
      tpu.vector_store %arg6[%c0_14, %c0_15], %15 {strides = array<i32>} : memref<24x128xf32, #tpu.memory_space<vmem>>, vector<24x128xf32>,
    } else {
    }
    return
  }
  func.func @transform_0(%arg0: i32, %arg1: i32, %arg2: i32) -> (i32, i32) {
    %c0_i32 = arith.constant 0 : i32
    return %arg0, %arg2 : i32, i32
  }
  func.func @transform_1(%arg0: i32, %arg1: i32, %arg2: i32) -> (i32, i32) {
    %c0_i32 = arith.constant 0 : i32
    return %arg2, %arg1 : i32, i32
  }
  func.func @transform_2(%arg0: i32, %arg1: i32, %arg2: i32) -> (i32, i32) {
    %c0_i32 = arith.constant 0 : i32
    %c0_i32_0 = arith.constant 0 : i32
    return %c0_i32, %arg1 : i32, i32
  }
  func.func @transform_3(%arg0: i32, %arg1: i32, %arg2: i32) -> (i32, i32) {
    %c0_i32 = arith.constant 0 : i32
    return %arg0, %arg1 : i32, i32
  }
}

module attributes {stable_mosaic.version = 11 : i64} {
  func.func @_attention_kernel(%arg0: i32, %arg1: memref<1x8x32xf32, #tpu.memory_space<vmem>>, %arg2: memref<1x12x32xf32, #tpu.memory_space<vmem>>, %arg3: memref<1x12x32xf32, #tpu.memory_space<vmem>>, %arg4: memref<1x1x12xf32, #tpu.memory_space<vmem>>, %arg5: memref<1x8x32xf32, #tpu.memory_space<vmem>>) attributes {dimension_semantics = [#tpu.dimension_semantics<parallel>], iteration_bounds = array<i64: 2>, scalar_prefetch = 0 : i64, scratch_operands = 0 : i64, tpu.core_type = #tpu.core_type<tc>, window_params = [{transform_indices = @transform_0, window_bounds = array<i64: 1, 8, 32>}, {transform_indices = @transform_1, window_bounds = array<i64: 1, 12, 32>}, {transform_indices = @transform_2, window_bounds = array<i64: 1, 12, 32>}, {transform_indices = @transform_3, window_bounds = array<i64: 1, 1, 12>}, {transform_indices = @transform_4, window_bounds = array<i64: 1, 8, 32>}]} {
    %c0 = arith.constant 0 : index
    %c0_0 = arith.constant 0 : index
    %c0_1 = arith.constant 0 : index
    %0 = vector.load %arg1[%c0, %c0_0, %c0_1] : memref<1x8x32xf32, #tpu.memory_space<vmem>>, vector<1x8x32xf32>
    %1 = vector.shape_cast %0 : vector<1x8x32xf32> to vector<8x32xf32>
    %c0_2 = arith.constant 0 : index
    %c0_3 = arith.constant 0 : index
    %c0_4 = arith.constant 0 : index
    %2 = vector.load %arg2[%c0_2, %c0_3, %c0_4] : memref<1x12x32xf32, #tpu.memory_space<vmem>>, vector<1x12x32xf32>
    %3 = vector.shape_cast %2 : vector<1x12x32xf32> to vector<12x32xf32>
    %c0_5 = arith.constant 0 : index
    %c0_6 = arith.constant 0 : index
    %c0_7 = arith.constant 0 : index
    %4 = vector.load %arg3[%c0_5, %c0_6, %c0_7] : memref<1x12x32xf32, #tpu.memory_space<vmem>>, vector<1x12x32xf32>
    %5 = vector.shape_cast %4 : vector<1x12x32xf32> to vector<12x32xf32>
    %c0_8 = arith.constant 0 : index
    %c0_9 = arith.constant 0 : index
    %c0_10 = arith.constant 0 : index
    %6 = vector.load %arg4[%c0_8, %c0_9, %c0_10] : memref<1x1x12xf32, #tpu.memory_space<vmem>>, vector<1x1x12xf32>
    %7 = vector.shape_cast %6 : vector<1x1x12xf32> to vector<1x12xf32>
    %cst = arith.constant 0.000000e+00 : f32
    %8 = vector.broadcast %cst : f32 to vector<1x12xf32>
    %9 = arith.cmpf one, %7, %8 : vector<1x12xf32>
    %cst_11 = arith.constant 0.000000e+00 : f32
    %cst_12 = arith.constant -1.000000e+09 : f32
    %10 = vector.broadcast %cst_11 : f32 to vector<1x12xf32>
    %11 = vector.broadcast %cst_12 : f32 to vector<1x12xf32>
    %12 = arith.select %9, %10, %11 : vector<1x12xi1>, vector<1x12xf32>
    %13 = vector.extract_strided_slice %1 {offsets = [0, 0], sizes = [8, 16], strides = [1, 1]} : vector<8x32xf32> to vector<8x16xf32>
    %14 = vector.extract_strided_slice %3 {offsets = [0, 0], sizes = [12, 16], strides = [1, 1]} : vector<12x32xf32> to vector<12x16xf32>
    %cst_13 = arith.constant dense<0.000000e+00> : vector<8x12xf32>
    %15 = tpu.matmul %13, %14, %cst_13 {dimension_numbers = #tpu.dot_dimension_numbers<[1], [1], [0], [0], [0, 0, 1, 0], [], []>} : vector<8x16xf32>, vector<12x16xf32>, vector<8x12xf32> -> vector<8x12xf32>
    %cst_14 = arith.constant 2.500000e-01 : f32
    %16 = vector.broadcast %cst_14 : f32 to vector<8x12xf32>
    %17 = arith.mulf %15, %16 : vector<8x12xf32>
    %18 = vector.broadcast %12 : vector<1x12xf32> to vector<8x12xf32>
    %19 = arith.addf %17, %18 : vector<8x12xf32>
    %cst_15 = arith.constant dense<0xFF800000> : vector<8xf32>
    %20 = vector.multi_reduction <maximumf>, %19, %cst_15 [1] : vector<8x12xf32> to vector<8xf32>
    %21 = vector.shape_cast %20 : vector<8xf32> to vector<8x1xf32>
    %22 = vector.broadcast %21 : vector<8x1xf32> to vector<8x12xf32>
    %23 = arith.subf %19, %22 : vector<8x12xf32>
    %24 = math.exp %23 : vector<8x12xf32>
    %cst_16 = arith.constant dense<0.000000e+00> : vector<8xf32>
    %25 = vector.multi_reduction <add>, %24, %cst_16 [1] : vector<8x12xf32> to vector<8xf32>
    %26 = vector.shape_cast %25 : vector<8xf32> to vector<8x1xf32>
    %27 = tpu.reciprocal %26 {approx = true} : vector<8x1xf32> -> vector<8x1xf32>
    %28 = vector.broadcast %27 : vector<8x1xf32> to vector<8x12xf32>
    %29 = arith.mulf %24, %28 : vector<8x12xf32>
    %30 = vector.extract_strided_slice %5 {offsets = [0, 0], sizes = [12, 16], strides = [1, 1]} : vector<12x32xf32> to vector<12x16xf32>
    %cst_17 = arith.constant dense<0.000000e+00> : vector<8x16xf32>
    %31 = tpu.matmul %29, %30, %cst_17 {dimension_numbers = #tpu.dot_dimension_numbers<[1], [0], [0], [1], [0, 0, 1, 1], [], []>} : vector<8x12xf32>, vector<12x16xf32>, vector<8x16xf32> -> vector<8x16xf32>
    %32 = vector.extract_strided_slice %1 {offsets = [0, 16], sizes = [8, 16], strides = [1, 1]} : vector<8x32xf32> to vector<8x16xf32>
    %33 = vector.extract_strided_slice %3 {offsets = [0, 16], sizes = [12, 16], strides = [1, 1]} : vector<12x32xf32> to vector<12x16xf32>
    %cst_18 = arith.constant dense<0.000000e+00> : vector<8x12xf32>
    %34 = tpu.matmul %32, %33, %cst_18 {dimension_numbers = #tpu.dot_dimension_numbers<[1], [1], [0], [0], [0, 0, 1, 0], [], []>} : vector<8x16xf32>, vector<12x16xf32>, vector<8x12xf32> -> vector<8x12xf32>
    %cst_19 = arith.constant 2.500000e-01 : f32
    %35 = vector.broadcast %cst_19 : f32 to vector<8x12xf32>
    %36 = arith.mulf %34, %35 : vector<8x12xf32>
    %37 = vector.broadcast %12 : vector<1x12xf32> to vector<8x12xf32>
    %38 = arith.addf %36, %37 : vector<8x12xf32>
    %cst_20 = arith.constant dense<0xFF800000> : vector<8xf32>
    %39 = vector.multi_reduction <maximumf>, %38, %cst_20 [1] : vector<8x12xf32> to vector<8xf32>
    %40 = vector.shape_cast %39 : vector<8xf32> to vector<8x1xf32>
    %41 = vector.broadcast %40 : vector<8x1xf32> to vector<8x12xf32>
    %42 = arith.subf %38, %41 : vector<8x12xf32>
    %43 = math.exp %42 : vector<8x12xf32>
    %cst_21 = arith.constant dense<0.000000e+00> : vector<8xf32>
    %44 = vector.multi_reduction <add>, %43, %cst_21 [1] : vector<8x12xf32> to vector<8xf32>
    %45 = vector.shape_cast %44 : vector<8xf32> to vector<8x1xf32>
    %46 = tpu.reciprocal %45 {approx = true} : vector<8x1xf32> -> vector<8x1xf32>
    %47 = vector.broadcast %46 : vector<8x1xf32> to vector<8x12xf32>
    %48 = arith.mulf %43, %47 : vector<8x12xf32>
    %49 = vector.extract_strided_slice %5 {offsets = [0, 16], sizes = [12, 16], strides = [1, 1]} : vector<12x32xf32> to vector<12x16xf32>
    %cst_22 = arith.constant dense<0.000000e+00> : vector<8x16xf32>
    %50 = tpu.matmul %48, %49, %cst_22 {dimension_numbers = #tpu.dot_dimension_numbers<[1], [0], [0], [1], [0, 0, 1, 1], [], []>} : vector<8x12xf32>, vector<12x16xf32>, vector<8x16xf32> -> vector<8x16xf32>
    %51 = tpu.concatenate %31, %50 in 1 : vector<8x16xf32>, vector<8x16xf32> -> vector<8x32xf32>
    %c0_23 = arith.constant 0 : index
    %c0_24 = arith.constant 0 : index
    %c0_25 = arith.constant 0 : index
    %52 = vector.load %arg5[%c0_23, %c0_24, %c0_25] : memref<1x8x32xf32, #tpu.memory_space<vmem>>, vector<1x8x32xf32>
    %53 = vector.shape_cast %52 : vector<1x8x32xf32> to vector<8x32xf32>
    %54 = vector.shape_cast %51 : vector<8x32xf32> to vector<1x8x32xf32>
    tpu.vector_store %arg5[%c0_23, %c0_24, %c0_25], %54 {strides = array<i32>} : memref<1x8x32xf32, #tpu.memory_space<vmem>>, vector<1x8x32xf32>,
    return
  }
  func.func @transform_0(%arg0: i32) -> (i32, i32, i32) {
    %c0_i32 = arith.constant 0 : i32
    %c0_i32_0 = arith.constant 0 : i32
    %c0_i32_1 = arith.constant 0 : i32
    return %arg0, %c0_i32, %c0_i32_0 : i32, i32, i32
  }
  func.func @transform_1(%arg0: i32) -> (i32, i32, i32) {
    %c0_i32 = arith.constant 0 : i32
    %c0_i32_0 = arith.constant 0 : i32
    %c0_i32_1 = arith.constant 0 : i32
    return %arg0, %c0_i32, %c0_i32_0 : i32, i32, i32
  }
  func.func @transform_2(%arg0: i32) -> (i32, i32, i32) {
    %c0_i32 = arith.constant 0 : i32
    %c0_i32_0 = arith.constant 0 : i32
    %c0_i32_1 = arith.constant 0 : i32
    return %arg0, %c0_i32, %c0_i32_0 : i32, i32, i32
  }
  func.func @transform_3(%arg0: i32) -> (i32, i32, i32) {
    %c0_i32 = arith.constant 0 : i32
    %c0_i32_0 = arith.constant 0 : i32
    %c0_i32_1 = arith.constant 0 : i32
    return %arg0, %c0_i32, %c0_i32_0 : i32, i32, i32
  }
  func.func @transform_4(%arg0: i32) -> (i32, i32, i32) {
    %c0_i32 = arith.constant 0 : i32
    %c0_i32_0 = arith.constant 0 : i32
    %c0_i32_1 = arith.constant 0 : i32
    return %arg0, %c0_i32, %c0_i32_0 : i32, i32, i32
  }
}

module attributes {stable_mosaic.version = 11 : i64} {
  func.func @_linear_kernel(%arg0: i32, %arg1: i32, %arg2: i32, %arg3: memref<16x128xf32, #tpu.memory_space<vmem>>, %arg4: memref<128x128xf32, #tpu.memory_space<vmem>>, %arg5: memref<1x128xf32, #tpu.memory_space<vmem>>, %arg6: memref<16x128xf32, #tpu.memory_space<vmem>>, %arg7: memref<16x128xf32, #tpu.memory_space<vmem>>) attributes {dimension_semantics = [#tpu.dimension_semantics<parallel>, #tpu.dimension_semantics<parallel>, #tpu.dimension_semantics<arbitrary>], iteration_bounds = array<i64: 1, 1, 1>, scalar_prefetch = 0 : i64, scratch_operands = 1 : i64, tpu.core_type = #tpu.core_type<tc>, window_params = [{transform_indices = @transform_0, window_bounds = array<i64: 16, 128>}, {transform_indices = @transform_1, window_bounds = array<i64: 128, 128>}, {transform_indices = @transform_2, window_bounds = array<i64: 1, 128>}, {transform_indices = @transform_3, window_bounds = array<i64: 16, 128>}]} {
    %c0_i32 = arith.constant 0 : i32
    %0 = arith.cmpi eq, %arg2, %c0_i32 : i32
    %1 = arith.extui %0 : i1 to i32
    %c0_i32_0 = arith.constant 0 : i32
    %2 = arith.cmpi ne, %1, %c0_i32_0 : i32
    scf.if %2 {
      %cst_10 = arith.constant 0.000000e+00 : f32
      %12 = vector.broadcast %cst_10 : f32 to vector<16x128xf32>
      %c0_11 = arith.constant 0 : index
      %c0_12 = arith.constant 0 : index
      %13 = vector.load %arg7[%c0_11, %c0_12] : memref<16x128xf32, #tpu.memory_space<vmem>>, vector<16x128xf32>
      tpu.vector_store %arg7[%c0_11, %c0_12], %12 {strides = array<i32>} : memref<16x128xf32, #tpu.memory_space<vmem>>, vector<16x128xf32>,
    } else {
    }
    %c0 = arith.constant 0 : index
    %c0_1 = arith.constant 0 : index
    %3 = vector.load %arg7[%c0, %c0_1] : memref<16x128xf32, #tpu.memory_space<vmem>>, vector<16x128xf32>
    %c0_2 = arith.constant 0 : index
    %c0_3 = arith.constant 0 : index
    %4 = vector.load %arg3[%c0_2, %c0_3] : memref<16x128xf32, #tpu.memory_space<vmem>>, vector<16x128xf32>
    %c0_4 = arith.constant 0 : index
    %c0_5 = arith.constant 0 : index
    %5 = vector.load %arg4[%c0_4, %c0_5] : memref<128x128xf32, #tpu.memory_space<vmem>>, vector<128x128xf32>
    %cst = arith.constant dense<0.000000e+00> : vector<16x128xf32>
    %6 = tpu.matmul %4, %5, %cst {dimension_numbers = #tpu.dot_dimension_numbers<[1], [0], [0], [1], [0, 0, 1, 1], [], []>} : vector<16x128xf32>, vector<128x128xf32>, vector<16x128xf32> -> vector<16x128xf32>
    %7 = arith.addf %3, %6 : vector<16x128xf32>
    %c0_6 = arith.constant 0 : index
    %c0_7 = arith.constant 0 : index
    %8 = vector.load %arg7[%c0_6, %c0_7] : memref<16x128xf32, #tpu.memory_space<vmem>>, vector<16x128xf32>
    tpu.vector_store %arg7[%c0_6, %c0_7], %7 {strides = array<i32>} : memref<16x128xf32, #tpu.memory_space<vmem>>, vector<16x128xf32>,
    %c0_i32_8 = arith.constant 0 : i32
    %9 = arith.cmpi eq, %arg2, %c0_i32_8 : i32
    %10 = arith.extui %9 : i1 to i32
    %c0_i32_9 = arith.constant 0 : i32
    %11 = arith.cmpi ne, %10, %c0_i32_9 : i32
    scf.if %11 {
      %c0_10 = arith.constant 0 : index
      %c0_11 = arith.constant 0 : index
      %12 = vector.load %arg7[%c0_10, %c0_11] : memref<16x128xf32, #tpu.memory_space<vmem>>, vector<16x128xf32>
      %c0_12 = arith.constant 0 : index
      %c0_13 = arith.constant 0 : index
      %13 = vector.load %arg5[%c0_12, %c0_13] : memref<1x128xf32, #tpu.memory_space<vmem>>, vector<1x128xf32>
      %14 = vector.broadcast %13 : vector<1x128xf32> to vector<16x128xf32>
      %15 = arith.addf %12, %14 : vector<16x128xf32>
      %cst_14 = arith.constant 0.000000e+00 : f32
      %16 = vector.broadcast %cst_14 : f32 to vector<16x128xf32>
      %17 = arith.maximumf %15, %16 : vector<16x128xf32>
      %c0_15 = arith.constant 0 : index
      %c0_16 = arith.constant 0 : index
      %18 = vector.load %arg6[%c0_15, %c0_16] : memref<16x128xf32, #tpu.memory_space<vmem>>, vector<16x128xf32>
      tpu.vector_store %arg6[%c0_15, %c0_16], %17 {strides = array<i32>} : memref<16x128xf32, #tpu.memory_space<vmem>>, vector<16x128xf32>,
    } else {
    }
    return
  }
  func.func @transform_0(%arg0: i32, %arg1: i32, %arg2: i32) -> (i32, i32) {
    %c0_i32 = arith.constant 0 : i32
    return %arg0, %arg2 : i32, i32
  }
  func.func @transform_1(%arg0: i32, %arg1: i32, %arg2: i32) -> (i32, i32) {
    %c0_i32 = arith.constant 0 : i32
    return %arg2, %arg1 : i32, i32
  }
  func.func @transform_2(%arg0: i32, %arg1: i32, %arg2: i32) -> (i32, i32) {
    %c0_i32 = arith.constant 0 : i32
    %c0_i32_0 = arith.constant 0 : i32
    return %c0_i32, %arg1 : i32, i32
  }
  func.func @transform_3(%arg0: i32, %arg1: i32, %arg2: i32) -> (i32, i32) {
    %c0_i32 = arith.constant 0 : i32
    return %arg0, %arg1 : i32, i32
  }
}

module attributes {stable_mosaic.version = 11 : i64} {
  func.func @_add_layernorm_kernel(%arg0: i32, %arg1: memref<16x32xf32, #tpu.memory_space<vmem>>, %arg2: memref<1x32xf32, #tpu.memory_space<vmem>>, %arg3: memref<1x32xf32, #tpu.memory_space<vmem>>, %arg4: memref<16x32xf32, #tpu.memory_space<vmem>>) attributes {dimension_semantics = [#tpu.dimension_semantics<parallel>], iteration_bounds = array<i64: 1>, scalar_prefetch = 0 : i64, scratch_operands = 0 : i64, tpu.core_type = #tpu.core_type<tc>, window_params = [{transform_indices = @transform_0, window_bounds = array<i64: 16, 32>}, {pipeline_mode = #tpu.pipeline_mode<synchronous>, transform_indices = @transform_1, window_bounds = array<i64: 1, 32>}, {pipeline_mode = #tpu.pipeline_mode<synchronous>, transform_indices = @transform_2, window_bounds = array<i64: 1, 32>}, {transform_indices = @transform_3, window_bounds = array<i64: 16, 32>}]} {
    %c0 = arith.constant 0 : index
    %c0_0 = arith.constant 0 : index
    %0 = vector.load %arg1[%c0, %c0_0] : memref<16x32xf32, #tpu.memory_space<vmem>>, vector<16x32xf32>
    %cst = arith.constant dense<0.000000e+00> : vector<16xf32>
    %1 = vector.multi_reduction <add>, %0, %cst [1] : vector<16x32xf32> to vector<16xf32>
    %2 = vector.shape_cast %1 : vector<16xf32> to vector<16x1xf32>
    %cst_1 = arith.constant 3.200000e+01 : f32
    %3 = vector.broadcast %cst_1 : f32 to vector<16x1xf32>
    %4 = arith.divf %2, %3 : vector<16x1xf32>
    %5 = vector.broadcast %4 : vector<16x1xf32> to vector<16x32xf32>
    %6 = arith.subf %0, %5 : vector<16x32xf32>
    %7 = arith.mulf %6, %6 : vector<16x32xf32>
    %cst_2 = arith.constant dense<0.000000e+00> : vector<16xf32>
    %8 = vector.multi_reduction <add>, %7, %cst_2 [1] : vector<16x32xf32> to vector<16xf32>
    %9 = vector.shape_cast %8 : vector<16xf32> to vector<16x1xf32>
    %cst_3 = arith.constant 3.200000e+01 : f32
    %10 = vector.broadcast %cst_3 : f32 to vector<16x1xf32>
    %11 = arith.divf %9, %10 : vector<16x1xf32>
    %cst_4 = arith.constant 9.99999974E-6 : f32
    %12 = vector.broadcast %cst_4 : f32 to vector<16x1xf32>
    %13 = arith.addf %11, %12 : vector<16x1xf32>
    %14 = math.rsqrt %13 : vector<16x1xf32>
    %15 = vector.broadcast %14 : vector<16x1xf32> to vector<16x32xf32>
    %16 = arith.mulf %6, %15 : vector<16x32xf32>
    %c0_5 = arith.constant 0 : index
    %c0_6 = arith.constant 0 : index
    %17 = vector.load %arg2[%c0_5, %c0_6] : memref<1x32xf32, #tpu.memory_space<vmem>>, vector<1x32xf32>
    %18 = vector.broadcast %17 : vector<1x32xf32> to vector<16x32xf32>
    %19 = arith.mulf %16, %18 : vector<16x32xf32>
    %c0_7 = arith.constant 0 : index
    %c0_8 = arith.constant 0 : index
    %20 = vector.load %arg3[%c0_7, %c0_8] : memref<1x32xf32, #tpu.memory_space<vmem>>, vector<1x32xf32>
    %21 = vector.broadcast %20 : vector<1x32xf32> to vector<16x32xf32>
    %22 = arith.addf %19, %21 : vector<16x32xf32>
    %c0_9 = arith.constant 0 : index
    %c0_10 = arith.constant 0 : index
    %23 = vector.load %arg4[%c0_9, %c0_10] : memref<16x32xf32, #tpu.memory_space<vmem>>, vector<16x32xf32>
    tpu.vector_store %arg4[%c0_9, %c0_10], %22 {strides = array<i32>} : memref<16x32xf32, #tpu.memory_space<vmem>>, vector<16x32xf32>,
    return
  }
  func.func @transform_0(%arg0: i32) -> (i32, i32) {
    %c0_i32 = arith.constant 0 : i32
    %c0_i32_0 = arith.constant 0 : i32
    return %arg0, %c0_i32 : i32, i32
  }
  func.func @transform_1(%arg0: i32) -> (i32, i32) {
    %c0_i32 = arith.constant 0 : i32
    %c0_i32_0 = arith.constant 0 : i32
    %c0_i32_1 = arith.constant 0 : i32
    return %c0_i32, %c0_i32_0 : i32, i32
  }
  func.func @transform_2(%arg0: i32) -> (i32, i32) {
    %c0_i32 = arith.constant 0 : i32
    %c0_i32_0 = arith.constant 0 : i32
    %c0_i32_1 = arith.constant 0 : i32
    return %c0_i32, %c0_i32_0 : i32, i32
  }
  func.func @transform_3(%arg0: i32) -> (i32, i32) {
    %c0_i32 = arith.constant 0 : i32
    %c0_i32_0 = arith.constant 0 : i32
    return %arg0, %c0_i32 : i32, i32
  }
}

</mosaic_0001>

<bundles_post_ra>
// kernel: transformer_decoder_forward.31
= control target key start
LH: loop header
LB: loop body
LE: loop exit
PB: predicated region body
PF: predicated region fallthrough
CT: control target
= control target key end

     0   :  { %s184_s1 = inlined_call_operand.vmem [shape: f32[128,128], index: 1, kind: input, shape index: {}]   ;;  %s185_s2 = inlined_call_operand.vmem [shape: f32[1,128], index: 2, kind: input, shape index: {}]   ;;  %s186_s0 = inlined_call_operand.vmem [shape: f32[16,128], index: 0, kind: input, shape index: {}]   ;;  %s187_s3 = inlined_call_operand.vmem [shape: f32[16,128], index: 3, kind: output, shape index: {}]  }
   0x1   :  { %v39_v0 = vld [vmem:[%s184_s1 + $0x78] sm:$0xff]  ;;  %v38_v1 = vld [vmem:[%s184_s1 + $0x70] sm:$0xff]  ;;  %v37_v2 = vld [vmem:[%s184_s1 + $0x68] sm:$0xff] }
   0x2   :  { %40 = vmatpush.msra.mxu0 %v39_v0  ;;  %84 = vmatpush.msra.mxu1 %v39_v0  ;;  %v36_v3 = vld [vmem:[%s184_s1 + $0x60] sm:$0xff]  ;;  %v35_v4 = vld [vmem:[%s184_s1 + $0x58] sm:$0xff]  ;;  %v34_v5 = vld [vmem:[%s184_s1 + $0x50] sm:$0xff] }
   0x3   :  { %v33_v6 = vld [vmem:[%s184_s1 + $0x48] sm:$0xff]  ;;  %v32_v7 = vld [vmem:[%s184_s1 + $0x40] sm:$0xff]  ;;  %v31_v8 = vld [vmem:[%s184_s1 + $0x38] sm:$0xff] }
   0x4   :  { %41 = vmatpush.msra.mxu0 %v38_v1  ;;  %85 = vmatpush.msra.mxu1 %v38_v1  ;;  %v30_v9 = vld [vmem:[%s184_s1 + $0x30] sm:$0xff]  ;;  %v29_v10 = vld [vmem:[%s184_s1 + $0x28] sm:$0xff]  ;;  %v28_v11 = vld [vmem:[%s184_s1 + $0x20] sm:$0xff] }
   0x5   :  { %v27_v12 = vld [vmem:[%s184_s1 + $0x18] sm:$0xff]  ;;  %v26_v13 = vld [vmem:[%s184_s1 + $0x10] sm:$0xff]  ;;  %v25_v14 = vld [vmem:[%s184_s1 + $0x8] sm:$0xff] }
   0x6   :  { %42 = vmatpush.msra.mxu0 %v37_v2  ;;  %86 = vmatpush.msra.mxu1 %v37_v2  ;;  %v24_v15 = vld [vmem:[%s184_s1] sm:$0xff]  ;;  %v23_v17 = vld [vmem:[%s186_s0 + $0x8] sm:$0xff] }
   0x7   :  { %v22_v16 = vld [vmem:[%s186_s0] sm:$0xff] }
   0x8   :  { %43 = vmatpush.msra.mxu0 %v36_v3  ;;  %87 = vmatpush.msra.mxu1 %v36_v3  ;;  %v100_v18 = vld [vmem:[%s185_s2] ss:$0 sm:$0xff] }
   0xa   :  { %44 = vmatpush.msra.mxu0 %v35_v4  ;;  %88 = vmatpush.msra.mxu1 %v35_v4 }
   0xc   :  { %45 = vmatpush.msra.mxu0 %v34_v5  ;;  %89 = vmatpush.msra.mxu1 %v34_v5 }
   0xe   :  { %46 = vmatpush.msra.mxu0 %v33_v6  ;;  %90 = vmatpush.msra.mxu1 %v33_v6 }
  0x10   :  { %47 = vmatpush.msra.mxu0 %v32_v7  ;;  %91 = vmatpush.msra.mxu1 %v32_v7 }
  0x12   :  { %48 = vmatpush.msra.mxu0 %v31_v8  ;;  %92 = vmatpush.msra.mxu1 %v31_v8 }
  0x14   :  { %49 = vmatpush.msra.mxu0 %v30_v9  ;;  %93 = vmatpush.msra.mxu1 %v30_v9 }
  0x16   :  { %50 = vmatpush.msra.mxu0 %v29_v10  ;;  %94 = vmatpush.msra.mxu1 %v29_v10 }
  0x18   :  { %51 = vmatpush.msra.mxu0 %v28_v11  ;;  %95 = vmatpush.msra.mxu1 %v28_v11 }
  0x1a   :  { %52 = vmatpush.msra.mxu0 %v27_v12  ;;  %96 = vmatpush.msra.mxu1 %v27_v12 }
  0x1c   :  { %53 = vmatpush.msra.mxu0 %v26_v13  ;;  %97 = vmatpush.msra.mxu1 %v26_v13 }
  0x1e   :  { %54 = vmatpush.msra.mxu0 %v25_v14  ;;  %98 = vmatpush.msra.mxu1 %v25_v14 }
  0x20   :  { %55 = vmatpush.msra.mxu0 %v24_v15  ;;  %99 = vmatpush.msra.mxu1 %v24_v15 }
  0x21   :  { %56 = vmatmul.f32.vlgmr.msra.gmra.mxu0 %v22_v16  ;;  %59 = vmatmul.f32.vlgmr.msra.gmra.mxu1 %v23_v17 }
  0x9e   :  { %v57_v19 = vpop.f32.mrf.mxu0  ;;  %v60_v20 = vpop.f32.mrf.mxu1 }
  0x9f   :  { %v76_v21 = vadd.f32 %v100_v18, %v57_v19  ;;  %v77_v22 = vadd.f32 %v100_v18, %v60_v20 }
  0xa1   :  { %78 = vst [vmem:[%s187_s3] sm:$0xff] %v76_v21 }
  0xa2   :  { %79 = vst [vmem:[%s187_s3 + $0x8] sm:$0xff] %v77_v22 }

// kernel: transformer_decoder_forward.32
= control target key start
LH: loop header
LB: loop body
LE: loop exit
PB: predicated region body
PF: predicated region fallthrough
CT: control target
= control target key end

     0   :  { %s492_s12 = smov 0   ;;  %s535_s0 = inlined_call_operand.vmem [shape: f32[2,8,32], index: 0, kind: input, shape index: {}]   ;;  %s536_s1 = inlined_call_operand.vmem [shape: f32[2,8,32], index: 1, kind: input, shape index: {}]   ;;  %s537_s2 = inlined_call_operand.vmem [shape: f32[2,8,32], index: 2, kind: input, shape index: {}]   ;;  %s538_s3 = inlined_call_operand.vmem [shape: f32[2,8,32], index: 3, kind: output, shape index: {}]  }
   0x1 LB: > { %s425_s13 = sadd.s32 4294967295, %s467_s12   ;;  %p429_p0 = scmp.ge.s32.totalorder %s467_s12, 1  ;;  %s467_s12 = sphi %s492_s12, %s13_s12  }
   0x2   : > { %p154_p1 = scmp.lt.s32.totalorder %s467_s12, 3 }
   0x4   : > { %p155_p2 = pnand %p429_p0, %p154_p1 }
   0x5   : > { %p184_p3 = scmp.lt.s32.totalorder (!%p155_p2), %s425_s13, 1  ;;  %s469_s18 = smov (!%p155_p2), 112  }
   0x6   : > { %158 = sbr.rel (%p155_p2) target bundleno = 777 (0x309), region = 32  ;;  %s471_s25 = smov (!%p155_p2), 16  }
   0xb   : > { %s540_s13 = smov (!%p184_p3, %s425_s13), 1  ;;  %vm209_vm0 = vcmask 130048   ;;  %v203_v4 = vlaneseq  ;;  %v470_v8 = vmov -1e+09   ;;  %vm238_vm2 = vcmask 64512  }
   0xc   : > { %s500_s14 = sshll.u32 %s540_s13, 3  ;;  %vm346_vm3 = vcmask 261120  }
   0xd   : > { %s191_s17 = scalar_lea.vmem %s536_s1, %s500_s14  ;;  %s187_s21 = scalar_lea.vmem %s535_s0, %s500_s14  ;;  %v204_v5 = vshrl.u32 %v203_v4, 7  ;;  %v206_v6 = vand.u32 127, %v203_v4 }
   0xe   : > { %v201_v0 = vld [vmem:[%s191_s17] sm:$0xff]  ;;  %s195_s24 = scalar_lea.vmem %s537_s2, %s500_s14  ;;  %s199_s28 = scalar_lea.vmem %s538_s3, %s500_s14 }
   0xf   : > { %275 = vrot.lane.b32.xlu0 %v201_v0, %s469_s18  ;;  %v200_v1 = vld [vmem:[%s187_s21] sm:$0xff]  ;;  %434 = vmatpush.xpose.msk.msra.mxu0 %vm209_vm0, %v201_v0  ;;  %vm207_vm1 = vcmp.ge.s32.totalorder %v204_v5, %v206_v6 }
  0x10   : > { %v208_v9 = vsel %vm207_vm1, 0.0, %v470_v8  ;;  %v202_v17 = vld [vmem:[%s195_s24] sm:$0xff] }
  0x11   : > { %268 = vmatpush.msra.mxu1 %v202_v17 }
  0x12   : > { %435 = vmatmul.msk.f32.vlgmr.msra.gmra.mxu0 %vm209_vm0, %v200_v1 }
  0x17   : > { %273 = vrot.lane.b32.xlu0 %v200_v1, %s469_s18 }
  0x81   : > { %v276_v2 = vpop.permute.xlu0 %275 }
  0x82   : > { %437 = vmatpush.xpose.msk.msra.mxu2 %vm209_vm0, %v276_v2 }
  0x89   : > { %v274_v3 = vpop.permute.xlu0 %273 }
  0x8a   : > { %438 = vmatmul.msk.f32.vlgmr.msra.gmra.mxu2 %vm209_vm0, %v274_v3 }
  0x8f   : > { %v233_v10 = vpop.f32.mrf.mxu0 }
  0x90   : > { %v236_v13 = vmul.f32 0.25, %v233_v10 }
  0x92   : > { %v237_v15 = vadd.f32 %v236_v13, %v208_v9 }
  0x94   : > { %v239_v16 = vsel %vm238_vm2, %v237_v15, -inf }
 0x10d   : > { %v298_v7 = vpop.f32.mrf.mxu2 }
 0x10e   : > { %v301_v11 = vmul.f32 0.25, %v298_v7 }
 0x110   : > { %v302_v12 = vadd.f32 %v301_v11, %v208_v9 }
 0x112   : > { %v303_v14 = vsel %vm238_vm2, %v302_v12, -inf }
 0x113   : > { %304 = vmax.xlane.f32.xlu1 %v303_v14 }
 0x11b   : > { %240 = vmax.xlane.f32.xlu1 %v239_v16 }
 0x186   : > { %v305_v18 = vpop.xlane.xlu1 %304 }
 0x187   : > { %v306_v19 = vsub.f32 %v302_v12, %v305_v18 }
 0x189   : > { %v307_v20 = vmul.f32 1.442695, %v306_v19 }
 0x18b   : > { %453 = vpow2.f32 %v307_v20 }
 0x18e   : > { %v241_v21 = vpop.xlane.xlu1 %240 }
 0x18f   : > { %v242_v22 = vsub.f32 %v237_v15, %v241_v21 }
 0x191   : > { %v454_v23 = vpop.eup %453  ;;  %v243_v24 = vmul.f32 1.442695, %v242_v22 }
 0x192   : > { %v309_v25 = vsel %vm238_vm2, %v454_v23, 0.0 }
 0x193   : > { %455 = vpow2.f32 %v243_v24  ;;  %310 = vadd.xlane.f32.xlu2 %v309_v25 }
 0x199   : > { %v456_v26 = vpop.eup %455 }
 0x19a   : > { %v245_v27 = vsel %vm238_vm2, %v456_v26, 0.0 }
 0x19b   : > { %246 = vadd.xlane.f32.xlu0 %v245_v27 }
 0x1ab   : > { %315 = vrot.lane.b32.xlu2 %v202_v17, %s469_s18 }
 0x206   : > { %v311_v28 = vpop.xlane.xlu2 %310 }
 0x207   : > { %457 = vrcp.f32 %v311_v28 }
 0x20d   : > { %v458_v29 = vpop.eup %457 }
 0x20e   : > { %v316_v30 = vpop.permute.xlu2 %315  ;;  %v247_v31 = vpop.xlane.xlu0 %246  ;;  %v313_v32 = vmul.f32 %v458_v29, %v454_v23 }
 0x20f   : > { %459 = vrcp.f32 %v247_v31  ;;  %336 = vmatpush.msra.mxu3 %v316_v30 }
 0x210   : > { %439 = vmatmul.msk.f32.vlgmr.msra.gmra.mxu3 %vm238_vm2, %v313_v32 }
 0x215   : > { %v460_v33 = vpop.eup %459 }
 0x216   : > { %v249_v34 = vmul.f32 %v460_v33, %v456_v26 }
 0x218   : > { %436 = vmatmul.msk.f32.vlgmr.msra.gmra.mxu1 %vm238_vm2, %v249_v34 }
 0x293   : > { %v338_v35 = vpop.f32.mrf.mxu3 }
 0x294   : > { %342 = vrot.lane.b32.xlu1 %v338_v35, %s471_s25 }
 0x295   : > { %v270_v36 = vpop.f32.mrf.mxu1 }
 0x306   : > { %v343_v37 = vpop.permute.xlu1 %342 }
 0x307   : > { %v345_v38 = vsel %vm209_vm0, %v270_v36, %v343_v37 }
 0x308   : > { %347 = vst.msk [vmem:[%s199_s28] sm:$0xff] %vm346_vm3, %v345_v38 }
 0x309 PF: > { %s13_s12 = sadd.s32 1, %s467_s12  }
 0x30a   : > { %p10_p4 = scmp.ge.s32.totalorder %s13_s12, 4  }
 0x30c   :  { %12 = sbr.rel (!%p10_p4) target bundleno = 1 (0x1), region = 68 }

// kernel: transformer_decoder_forward.30
= control target key start
LH: loop header
LB: loop body
LE: loop exit
PB: predicated region body
PF: predicated region fallthrough
CT: control target
= control target key end

     0   :  { %s166_s1 = inlined_call_operand.vmem [shape: f32[128,128], index: 1, kind: input, shape index: {}]   ;;  %s167_s0 = inlined_call_operand.vmem [shape: f32[16,128], index: 0, kind: input, shape index: {}]   ;;  %s168_s2 = inlined_call_operand.vmem [shape: f32[16,128], index: 2, kind: output, shape index: {}]  }
   0x1   :  { %v36_v0 = vld [vmem:[%s166_s1 + $0x78] sm:$0xff]  ;;  %v35_v1 = vld [vmem:[%s166_s1 + $0x70] sm:$0xff]  ;;  %v34_v2 = vld [vmem:[%s166_s1 + $0x68] sm:$0xff] }
   0x2   :  { %37 = vmatpush.msra.mxu0 %v36_v0  ;;  %75 = vmatpush.msra.mxu1 %v36_v0  ;;  %v33_v3 = vld [vmem:[%s166_s1 + $0x60] sm:$0xff]  ;;  %v32_v4 = vld [vmem:[%s166_s1 + $0x58] sm:$0xff]  ;;  %v31_v5 = vld [vmem:[%s166_s1 + $0x50] sm:$0xff] }
   0x3   :  { %v30_v6 = vld [vmem:[%s166_s1 + $0x48] sm:$0xff]  ;;  %v29_v7 = vld [vmem:[%s166_s1 + $0x40] sm:$0xff]  ;;  %v28_v8 = vld [vmem:[%s166_s1 + $0x38] sm:$0xff] }
   0x4   :  { %38 = vmatpush.msra.mxu0 %v35_v1  ;;  %76 = vmatpush.msra.mxu1 %v35_v1  ;;  %v27_v9 = vld [vmem:[%s166_s1 + $0x30] sm:$0xff]  ;;  %v26_v10 = vld [vmem:[%s166_s1 + $0x28] sm:$0xff]  ;;  %v25_v11 = vld [vmem:[%s166_s1 + $0x20] sm:$0xff] }
   0x5   :  { %v24_v12 = vld [vmem:[%s166_s1 + $0x18] sm:$0xff]  ;;  %v23_v13 = vld [vmem:[%s166_s1 + $0x10] sm:$0xff]  ;;  %v22_v14 = vld [vmem:[%s166_s1 + $0x8] sm:$0xff] }
   0x6   :  { %39 = vmatpush.msra.mxu0 %v34_v2  ;;  %77 = vmatpush.msra.mxu1 %v34_v2  ;;  %v21_v15 = vld [vmem:[%s166_s1] sm:$0xff]  ;;  %v20_v17 = vld [vmem:[%s167_s0 + $0x8] sm:$0xff] }
   0x7   :  { %v19_v16 = vld [vmem:[%s167_s0] sm:$0xff] }
   0x8   :  { %40 = vmatpush.msra.mxu0 %v33_v3  ;;  %78 = vmatpush.msra.mxu1 %v33_v3 }
   0xa   :  { %41 = vmatpush.msra.mxu0 %v32_v4  ;;  %79 = vmatpush.msra.mxu1 %v32_v4 }
   0xc   :  { %42 = vmatpush.msra.mxu0 %v31_v5  ;;  %80 = vmatpush.msra.mxu1 %v31_v5 }
   0xe   :  { %43 = vmatpush.msra.mxu0 %v30_v6  ;;  %81 = vmatpush.msra.mxu1 %v30_v6 }
  0x10   :  { %44 = vmatpush.msra.mxu0 %v29_v7  ;;  %82 = vmatpush.msra.mxu1 %v29_v7 }
  0x12   :  { %45 = vmatpush.msra.mxu0 %v28_v8  ;;  %83 = vmatpush.msra.mxu1 %v28_v8 }
  0x14   :  { %46 = vmatpush.msra.mxu0 %v27_v9  ;;  %84 = vmatpush.msra.mxu1 %v27_v9 }
  0x16   :  { %47 = vmatpush.msra.mxu0 %v26_v10  ;;  %85 = vmatpush.msra.mxu1 %v26_v10 }
  0x18   :  { %48 = vmatpush.msra.mxu0 %v25_v11  ;;  %86 = vmatpush.msra.mxu1 %v25_v11 }
  0x1a   :  { %49 = vmatpush.msra.mxu0 %v24_v12  ;;  %87 = vmatpush.msra.mxu1 %v24_v12 }
  0x1c   :  { %50 = vmatpush.msra.mxu0 %v23_v13  ;;  %88 = vmatpush.msra.mxu1 %v23_v13 }
  0x1e   :  { %51 = vmatpush.msra.mxu0 %v22_v14  ;;  %89 = vmatpush.msra.mxu1 %v22_v14 }
  0x20   :  { %52 = vmatpush.msra.mxu0 %v21_v15  ;;  %90 = vmatpush.msra.mxu1 %v21_v15 }
  0x21   :  { %53 = vmatmul.f32.vlgmr.msra.gmra.mxu0 %v19_v16  ;;  %56 = vmatmul.f32.vlgmr.msra.gmra.mxu1 %v20_v17 }
  0x9e   :  { %v54_v18 = vpop.f32.mrf.mxu0  ;;  %v57_v19 = vpop.f32.mrf.mxu1 }
  0x9f   :  { %69 = vst [vmem:[%s168_s2] sm:$0xff] %v54_v18 }
  0xa0   :  { %70 = vst [vmem:[%s168_s2 + $0x8] sm:$0xff] %v57_v19 }

// kernel: transformer_decoder_forward.34
= control target key start
LH: loop header
LB: loop body
LE: loop exit
PB: predicated region body
PF: predicated region fallthrough
CT: control target
= control target key end

     0   :  { %vm23_vm0 = vcmask 261120   ;;  %v102_v8 = vmov 32.0   ;;  %s158_s0 = inlined_call_operand.vmem [shape: f32[16,32], index: 0, kind: input, shape index: {}]   ;;  %s159_s1 = inlined_call_operand.vmem [shape: f32[16,32], index: 1, kind: input, shape index: {}]   ;;  %s160_s2 = inlined_call_operand.vmem [shape: f32[1,32], index: 2, kind: input, shape index: {}]   ;;  %s161_s3 = inlined_call_operand.vmem [shape: f32[1,32], index: 3, kind: input, shape index: {}]   ;;  %s162_s4 = inlined_call_operand.vmem [shape: f32[16,32], index: 4, kind: output, shape index: {}]  }
   0x1   :  { %v17_v0 = vld [vmem:[%s158_s0] sm:$0xff]  ;;  %v18_v3 = vld [vmem:[%s158_s0 + $0x8] sm:$0xff]  ;;  %96 = vrcp.f32 %v102_v8 }
   0x2   :  { %v19_v1 = vld [vmem:[%s159_s1] sm:$0xff]  ;;  %v20_v4 = vld [vmem:[%s159_s1 + $0x8] sm:$0xff] }
   0x3   :  { %v21_v2 = vadd.f32 %v19_v1, %v17_v0  ;;  %v22_v6 = vadd.f32 %v20_v4, %v18_v3  ;;  %v94_v39 = vld [vmem:[%s160_s2] ss:$0 sm:$0xff] }
   0x4   :  { %v95_v42 = vld [vmem:[%s161_s3] ss:$0 sm:$0xff] }
   0x5   :  { %v24_v5 = vsel %vm23_vm0, %v21_v2, 0.0  ;;  %v27_v7 = vsel %vm23_vm0, %v22_v6, 0.0 }
   0x6   :  { %25 = vadd.xlane.f32.xlu0 %v24_v5 }
   0x7   :  { %v97_v9 = vpop.eup %96 }
   0x8   :  { %v31_v10 = vmul.f32 32.0, %v97_v9  ;;  %vm35_vm1 = vweird.f32 %v97_v9 }
   0xa   :  { %v32_v11 = vsub.f32 1.0, %v31_v10 }
   0xc   :  { %v33_v12 = vmul.f32 %v97_v9, %v32_v11 }
   0xe   :  { %28 = vadd.xlane.f32.xlu0 %v27_v7  ;;  %v34_v13 = vadd.f32 %v97_v9, %v33_v12 }
  0x10   :  { %v36_v14 = vsel %vm35_vm1, %v97_v9, %v34_v13 }
  0x79   :  { %v26_v15 = vpop.xlane.xlu0 %25 }
  0x7a   :  { %v37_v16 = vmul.f32 %v36_v14, %v26_v15 }
  0x7c   :  { %v39_v17 = vsub.f32 %v21_v2, %v37_v16 }
  0x7e   :  { %v41_v18 = vmul.f32 %v39_v17, %v39_v17 }
  0x80   :  { %v43_v19 = vsel %vm23_vm0, %v41_v18, 0.0 }
  0x81   :  { %44 = vadd.xlane.f32.xlu1 %v43_v19  ;;  %v29_v20 = vpop.xlane.xlu0 %28 }
  0x82   :  { %v38_v21 = vmul.f32 %v36_v14, %v29_v20 }
  0x84   :  { %v40_v22 = vsub.f32 %v22_v6, %v38_v21 }
  0x86   :  { %v42_v23 = vmul.f32 %v40_v22, %v40_v22 }
  0x88   :  { %v46_v24 = vsel %vm23_vm0, %v42_v23, 0.0 }
  0x89   :  { %47 = vadd.xlane.f32.xlu1 %v46_v24 }
  0xf4   :  { %v45_v25 = vpop.xlane.xlu1 %44 }
  0xf5   :  { %v49_v26 = vmul.f32 %v45_v25, %v36_v14 }
  0xf7   :  { %v51_v27 = vadd.f32 1e-05, %v49_v26 }
  0xf9   :  { %98 = vrsqrt.f32 %v51_v27  ;;  %vm59_vm3 = vweird.f32 %v51_v27 }
  0xfc   :  { %v48_v28 = vpop.xlane.xlu1 %47 }
  0xfd   :  { %v50_v29 = vmul.f32 %v48_v28, %v36_v14 }
  0xff   :  { %v99_v30 = vpop.eup %98  ;;  %v52_v31 = vadd.f32 1e-05, %v50_v29 }
 0x100   :  { %v54_v32 = vmul.f32 %v99_v30, %v51_v27  ;;  %vm60_vm2 = vweird.f32 %v99_v30 }
 0x101   :  { %100 = vrsqrt.f32 %v52_v31  ;;  %vm61_vm4 = vmor %vm59_vm3, %vm60_vm2  ;;  %vm69_vm6 = vweird.f32 %v52_v31 }
 0x102   :  { %v55_v33 = vmul.f32 %v99_v30, %v54_v32 }
 0x104   :  { %v56_v34 = vmul.f32 0.5, %v55_v33 }
 0x106   :  { %v57_v35 = vsub.f32 1.5, %v56_v34 }
 0x107   :  { %v101_v36 = vpop.eup %100 }
 0x108   :  { %v58_v37 = vmul.f32 %v99_v30, %v57_v35  ;;  %v64_v38 = vmul.f32 %v101_v36, %v52_v31  ;;  %vm70_vm5 = vweird.f32 %v101_v36 }
 0x109   :  { %vm71_vm7 = vmor %vm69_vm6, %vm70_vm5 }
 0x10a   :  { %v62_v40 = vsel %vm61_vm4, %v99_v30, %v58_v37  ;;  %v65_v41 = vmul.f32 %v101_v36, %v64_v38 }
 0x10b   :  { %v73_v43 = vmul.f32 %v62_v40, %v39_v17 }
 0x10c   :  { %v66_v44 = vmul.f32 0.5, %v65_v41 }
 0x10d   :  { %v79_v45 = vmul.f32 %v94_v39, %v73_v43 }
 0x10e   :  { %v67_v46 = vsub.f32 1.5, %v66_v44 }
 0x10f   :  { %v85_v47 = vadd.f32 %v95_v42, %v79_v45 }
 0x110   :  { %v68_v48 = vmul.f32 %v101_v36, %v67_v46 }
 0x111   :  { %87 = vst.msk [vmem:[%s162_s4] sm:$0xff] %vm23_vm0, %v85_v47 }
 0x112   :  { %v72_v49 = vsel %vm71_vm7, %v101_v36, %v68_v48 }
 0x113   :  { %v74_v50 = vmul.f32 %v72_v49, %v40_v22 }
 0x115   :  { %v80_v51 = vmul.f32 %v94_v39, %v74_v50 }
 0x117   :  { %v86_v52 = vadd.f32 %v95_v42, %v80_v51 }
 0x119   :  { %88 = vst.msk [vmem:[%s162_s4 + $0x8] sm:$0xff] %vm23_vm0, %v86_v52 }

// kernel: transformer_decoder_forward.36
= control target key start
LH: loop header
LB: loop body
LE: loop exit
PB: predicated region body
PF: predicated region fallthrough
CT: control target
= control target key end

     0   :  { %s217_s1 = inlined_call_operand.vmem [shape: f32[128,128], index: 1, kind: input, shape index: {}]   ;;  %s218_s2 = inlined_call_operand.vmem [shape: f32[1,128], index: 2, kind: input, shape index: {}]   ;;  %s219_s0 = inlined_call_operand.vmem [shape: f32[24,128], index: 0, kind: input, shape index: {}]   ;;  %s220_s3 = inlined_call_operand.vmem [shape: f32[24,128], index: 3, kind: output, shape index: {}]  }
   0x1   :  { %v42_v0 = vld [vmem:[%s217_s1 + $0x78] sm:$0xff]  ;;  %v41_v1 = vld [vmem:[%s217_s1 + $0x70] sm:$0xff]  ;;  %v40_v2 = vld [vmem:[%s217_s1 + $0x68] sm:$0xff] }
   0x2   :  { %96 = vmatpush.msra.mxu2 %v42_v0  ;;  %43 = vmatpush.msra.mxu0 %v42_v0  ;;  %v39_v3 = vld [vmem:[%s217_s1 + $0x60] sm:$0xff]  ;;  %v38_v4 = vld [vmem:[%s217_s1 + $0x58] sm:$0xff]  ;;  %v37_v5 = vld [vmem:[%s217_s1 + $0x50] sm:$0xff] }
   0x3   :  { %95 = vmatpush.msra.mxu1 %v42_v0  ;;  %v36_v6 = vld [vmem:[%s217_s1 + $0x48] sm:$0xff]  ;;  %v35_v7 = vld [vmem:[%s217_s1 + $0x40] sm:$0xff]  ;;  %v34_v8 = vld [vmem:[%s217_s1 + $0x38] sm:$0xff] }
   0x4   :  { %98 = vmatpush.msra.mxu2 %v41_v1  ;;  %44 = vmatpush.msra.mxu0 %v41_v1  ;;  %v33_v9 = vld [vmem:[%s217_s1 + $0x30] sm:$0xff]  ;;  %v32_v10 = vld [vmem:[%s217_s1 + $0x28] sm:$0xff]  ;;  %v31_v11 = vld [vmem:[%s217_s1 + $0x20] sm:$0xff] }
   0x5   :  { %97 = vmatpush.msra.mxu1 %v41_v1  ;;  %v30_v12 = vld [vmem:[%s217_s1 + $0x18] sm:$0xff]  ;;  %v29_v13 = vld [vmem:[%s217_s1 + $0x10] sm:$0xff]  ;;  %v28_v14 = vld [vmem:[%s217_s1 + $0x8] sm:$0xff] }
   0x6   :  { %100 = vmatpush.msra.mxu2 %v40_v2  ;;  %45 = vmatpush.msra.mxu0 %v40_v2  ;;  %v27_v15 = vld [vmem:[%s217_s1] sm:$0xff]  ;;  %v26_v16 = vld [vmem:[%s219_s0 + $0x10] sm:$0xff]  ;;  %v25_v18 = vld [vmem:[%s219_s0 + $0x8] sm:$0xff] }
   0x7   :  { %99 = vmatpush.msra.mxu1 %v40_v2  ;;  %v24_v17 = vld [vmem:[%s219_s0] sm:$0xff] }
   0x8   :  { %102 = vmatpush.msra.mxu2 %v39_v3  ;;  %46 = vmatpush.msra.mxu0 %v39_v3  ;;  %v127_v19 = vld [vmem:[%s218_s2] ss:$0 sm:$0xff] }
   0x9   :  { %101 = vmatpush.msra.mxu1 %v39_v3 }
   0xa   :  { %104 = vmatpush.msra.mxu2 %v38_v4  ;;  %47 = vmatpush.msra.mxu0 %v38_v4 }
   0xb   :  { %103 = vmatpush.msra.mxu1 %v38_v4 }
   0xc   :  { %106 = vmatpush.msra.mxu2 %v37_v5  ;;  %48 = vmatpush.msra.mxu0 %v37_v5 }
   0xd   :  { %105 = vmatpush.msra.mxu1 %v37_v5 }
   0xe   :  { %108 = vmatpush.msra.mxu2 %v36_v6  ;;  %49 = vmatpush.msra.mxu0 %v36_v6 }
   0xf   :  { %107 = vmatpush.msra.mxu1 %v36_v6 }
  0x10   :  { %110 = vmatpush.msra.mxu2 %v35_v7  ;;  %50 = vmatpush.msra.mxu0 %v35_v7 }
  0x11   :  { %109 = vmatpush.msra.mxu1 %v35_v7 }
  0x12   :  { %112 = vmatpush.msra.mxu2 %v34_v8  ;;  %51 = vmatpush.msra.mxu0 %v34_v8 }
  0x13   :  { %111 = vmatpush.msra.mxu1 %v34_v8 }
  0x14   :  { %114 = vmatpush.msra.mxu2 %v33_v9  ;;  %52 = vmatpush.msra.mxu0 %v33_v9 }
  0x15   :  { %113 = vmatpush.msra.mxu1 %v33_v9 }
  0x16   :  { %116 = vmatpush.msra.mxu2 %v32_v10  ;;  %53 = vmatpush.msra.mxu0 %v32_v10 }
  0x17   :  { %115 = vmatpush.msra.mxu1 %v32_v10 }
  0x18   :  { %118 = vmatpush.msra.mxu2 %v31_v11  ;;  %54 = vmatpush.msra.mxu0 %v31_v11 }
  0x19   :  { %117 = vmatpush.msra.mxu1 %v31_v11 }
  0x1a   :  { %120 = vmatpush.msra.mxu2 %v30_v12  ;;  %55 = vmatpush.msra.mxu0 %v30_v12 }
  0x1b   :  { %119 = vmatpush.msra.mxu1 %v30_v12 }
  0x1c   :  { %122 = vmatpush.msra.mxu2 %v29_v13  ;;  %56 = vmatpush.msra.mxu0 %v29_v13 }
  0x1d   :  { %121 = vmatpush.msra.mxu1 %v29_v13 }
  0x1e   :  { %124 = vmatpush.msra.mxu2 %v28_v14  ;;  %57 = vmatpush.msra.mxu0 %v28_v14 }
  0x1f   :  { %123 = vmatpush.msra.mxu1 %v28_v14 }
  0x20   :  { %126 = vmatpush.msra.mxu2 %v27_v15  ;;  %58 = vmatpush.msra.mxu0 %v27_v15 }
  0x21   :  { %65 = vmatmul.f32.vlgmr.msra.gmra.mxu2 %v26_v16  ;;  %125 = vmatpush.msra.mxu1 %v27_v15 }
  0x22   :  { %59 = vmatmul.f32.vlgmr.msra.gmra.mxu0 %v24_v17  ;;  %62 = vmatmul.f32.vlgmr.msra.gmra.mxu1 %v25_v18 }
  0x9f   :  { %v60_v20 = vpop.f32.mrf.mxu0  ;;  %v63_v21 = vpop.f32.mrf.mxu1 }
  0xa0   :  { %v85_v22 = vadd.f32 %v127_v19, %v60_v20  ;;  %v86_v23 = vadd.f32 %v127_v19, %v63_v21 }
  0xa2   :  { %88 = vst [vmem:[%s220_s3] sm:$0xff] %v85_v22 }
  0xa3   :  { %89 = vst [vmem:[%s220_s3 + $0x8] sm:$0xff] %v86_v23 }
  0xa4   :  { %v66_v24 = vpop.f32.mrf.mxu2 }
  0xa5   :  { %v87_v25 = vadd.f32 %v127_v19, %v66_v24 }
  0xa7   :  { %90 = vst [vmem:[%s220_s3 + $0x10] sm:$0xff] %v87_v25 }

// kernel: transformer_decoder_forward.37
= control target key start
LH: loop header
LB: loop body
LE: loop exit
PB: predicated region body
PF: predicated region fallthrough
CT: control target
= control target key end

     0   :  { %s578_s15 = smov 0   ;;  %s635_s0 = inlined_call_operand.vmem [shape: f32[2,8,32], index: 0, kind: input, shape index: {}]   ;;  %s636_s1 = inlined_call_operand.vmem [shape: f32[2,12,32], index: 1, kind: input, shape index: {}]   ;;  %s637_s2 = inlined_call_operand.vmem [shape: f32[2,12,32], index: 2, kind: input, shape index: {}]   ;;  %s638_s3 = inlined_call_operand.vmem [shape: f32[2,1,12], index: 3, kind: input, shape index: {}]   ;;  %s639_s4 = inlined_call_operand.vmem [shape: f32[2,8,32], index: 4, kind: output, shape index: {}]  }
   0x1 LB: > { %s498_s16 = sadd.s32 4294967295, %s548_s15   ;;  %p502_p0 = scmp.ge.s32.totalorder %s548_s15, 1  ;;  %s548_s15 = sphi %s578_s15, %s14_s15  }
   0x2   : > { %p189_p1 = scmp.lt.s32.totalorder %s548_s15, 3 }
   0x4   : > { %p190_p2 = pnand %p502_p0, %p189_p1 }
   0x5   : > { %p226_p3 = scmp.lt.s32.totalorder (!%p190_p2), %s498_s16, 1  ;;  %s550_s25 = smov (!%p190_p2), 112  }
   0x6   : > { %193 = sbr.rel (%p190_p2) target bundleno = 756 (0x2f4), region = 36  ;;  %s552_s6 = smov (!%p190_p2), 16  }
   0xb   : > { %s641_s16 = smov (!%p226_p3, %s498_s16), 1  ;;  %vm255_vm0 = vcmask 130048   ;;  %v551_v8 = vmov -1e+09   ;;  %vm290_vm2 = vcmask 97280   ;;  %vm305_vm3 = vcmask 1043456  }
   0xc   : > { %s521_s17 = sshll.u32 %s641_s16, 4  ;;  %s503_s18 = sshll.u32 %s641_s16, 3  ;;  %vm410_vm4 = vcmask 261120  }
   0xd   : > { %s234_s21 = scalar_lea.vmem %s636_s1, %s521_s17  ;;  %s229_s24 = scalar_lea.vmem %s635_s0, %s503_s18 }
   0xe   : > { %v249_v0 = vld [vmem:[%s234_s21 + $0x8] sm:$0xf]  ;;  %v247_v1 = vld [vmem:[%s229_s24] sm:$0xff]  ;;  %s607_s28 = scalar_lea.vmem %s637_s2, %s521_s17  ;;  %s242_s5 = scalar_lea.vmem %s638_s3, %s641_s16 }
   0xf   : > { %333 = vrot.lane.b32.xlu0 %v249_v0, %s550_s25  ;;  %509 = vmatpush.xpose.msk.msra.mxu0 %vm255_vm0, %v249_v0  ;;  %v248_v2 = vld [vmem:[%s234_s21] sm:$0xff]  ;;  %v251_v3 = vld [vmem:[%s607_s28 + $0x8] sm:$0xf]  ;;  %s246_s9 = scalar_lea.vmem %s639_s4, %s503_s18 }
  0x10   : > { %329 = vrot.lane.b32.xlu1 %v247_v1, %s550_s25  ;;  %v252_v6 = vld [vmem:[%s242_s5] sm:$0x1]  ;;  %512 = vmatpush.msk.msra.mxu1 %vm305_vm3, %v251_v3 }
  0x11   : > { %vm253_vm1 = vcmp.ne.f32.partialorder %v252_v6, 0.0  ;;  %v250_v25 = vld [vmem:[%s607_s28] sm:$0xff] }
  0x12   : > { %v254_v9 = vsel %vm253_vm1, 0.0, %v551_v8  ;;  %324 = vmatpush.msra.mxu1 %v250_v25 }
  0x13   : > { %510 = vmatpush.xpose.msk.msra.mxu0 %vm255_vm0, %v248_v2  ;;  %v287_v10 = vperm.slane %v254_v9, 0 }
  0x16   : > { %511 = vmatmul.msk.f32.vlgmr.msra.gmra.mxu0 %vm255_vm0, %v247_v1 }
  0x17   : > { %331 = vrot.lane.b32.xlu0 %v248_v2, %s550_s25 }
  0x1f   : > { %377 = vrot.lane.b32.xlu0 %v251_v3, %s550_s25 }
  0x81   : > { %v334_v4 = vpop.permute.xlu0 %333 }
  0x82   : > { %514 = vmatpush.xpose.msk.msra.mxu2 %vm255_vm0, %v334_v4  ;;  %v330_v7 = vpop.permute.xlu1 %329 }
  0x89   : > { %v332_v5 = vpop.permute.xlu0 %331 }
  0x8a   : > { %515 = vmatpush.xpose.msk.msra.mxu2 %vm255_vm0, %v332_v5 }
  0x8d   : > { %516 = vmatmul.msk.f32.vlgmr.msra.gmra.mxu2 %vm255_vm0, %v330_v7 }
  0x91   : > { %v378_v24 = vpop.permute.xlu0 %377 }
  0x92   : > { %517 = vmatpush.msk.msra.mxu3 %vm305_vm3, %v378_v24 }
  0x93   : > { %v282_v11 = vpop.f32.mrf.mxu0 }
  0x94   : > { %v285_v12 = vmul.f32 0.25, %v282_v11 }
  0x96   : > { %v289_v13 = vadd.f32 %v287_v10, %v285_v12 }
  0x98   : > { %v291_v14 = vsel %vm290_vm2, %v289_v13, -inf }
  0x99   : > { %292 = vmax.xlane.f32.xlu2 %v291_v14 }
 0x10c   : > { %v293_v15 = vpop.xlane.xlu2 %292 }
 0x10d   : > { %v294_v16 = vsub.f32 %v289_v13, %v293_v15 }
 0x10f   : > { %v295_v17 = vmul.f32 1.442695, %v294_v16 }
 0x110   : > { %v358_v18 = vpop.f32.mrf.mxu2 }
 0x111   : > { %534 = vpow2.f32 %v295_v17  ;;  %v361_v19 = vmul.f32 0.25, %v358_v18 }
 0x113   : > { %v362_v20 = vadd.f32 %v361_v19, %v287_v10 }
 0x115   : > { %v363_v21 = vsel %vm290_vm2, %v362_v20, -inf }
 0x116   : > { %364 = vmax.xlane.f32.xlu1 %v363_v21 }
 0x117   : > { %v535_v22 = vpop.eup %534 }
 0x118   : > { %v297_v23 = vsel %vm290_vm2, %v535_v22, 0.0 }
 0x119   : > { %298 = vadd.xlane.f32.xlu0 %v297_v23 }
 0x189   : > { %v365_v26 = vpop.xlane.xlu1 %364 }
 0x18a   : > { %v366_v27 = vsub.f32 %v362_v20, %v365_v26 }
 0x18c   : > { %v367_v28 = vmul.f32 1.442695, %v366_v27  ;;  %v299_v29 = vpop.xlane.xlu0 %298 }
 0x18d   : > { %536 = vrcp.f32 %v299_v29 }
 0x18e   : > { %538 = vpow2.f32 %v367_v28 }
 0x193   : > { %v537_v30 = vpop.eup %536 }
 0x194   : > { %v539_v31 = vpop.eup %538  ;;  %v301_v32 = vmul.f32 %v537_v30, %v535_v22 }
 0x195   : > { %v369_v33 = vsel %vm290_vm2, %v539_v31, 0.0 }
 0x196   : > { %370 = vadd.xlane.f32.xlu2 %v369_v33  ;;  %513 = vmatmul.msk.f32.vlgmr.msra.gmra.mxu1 %vm290_vm2, %v301_v32 }
 0x1ae   : > { %375 = vrot.lane.b32.xlu2 %v250_v25, %s550_s25 }
 0x209   : > { %v371_v34 = vpop.xlane.xlu2 %370 }
 0x20a   : > { %540 = vrcp.f32 %v371_v34 }
 0x210   : > { %v541_v35 = vpop.eup %540 }
 0x211   : > { %v376_v36 = vpop.permute.xlu2 %375  ;;  %v373_v37 = vmul.f32 %v541_v35, %v539_v31 }
 0x212   : > { %400 = vmatpush.msra.mxu3 %v376_v36 }
 0x213   : > { %518 = vmatmul.msk.f32.vlgmr.msra.gmra.mxu3 %vm290_vm2, %v373_v37  ;;  %v326_v39 = vpop.f32.mrf.mxu1 }
 0x296   : > { %v402_v38 = vpop.f32.mrf.mxu3 }
 0x297   : > { %406 = vrot.lane.b32.xlu2 %v402_v38, %s552_s6 }
 0x2f1   : > { %v407_v40 = vpop.permute.xlu2 %406 }
 0x2f2   : > { %v409_v41 = vsel %vm255_vm0, %v326_v39, %v407_v40 }
 0x2f3   : > { %411 = vst.msk [vmem:[%s246_s9] sm:$0xff] %vm410_vm4, %v409_v41 }
 0x2f4 PF: > { %s14_s15 = sadd.s32 1, %s548_s15  }
 0x2f5   : > { %p11_p4 = scmp.ge.s32.totalorder %s14_s15, 4  }
 0x2f7   :  { %13 = sbr.rel (!%p11_p4) target bundleno = 1 (0x1), region = 75 }

// kernel: transformer_decoder_forward.40
= control target key start
LH: loop header
LB: loop body
LE: loop exit
PB: predicated region body
PF: predicated region fallthrough
CT: control target
= control target key end

     0   :  { %s186_s1 = inlined_call_operand.vmem [shape: f32[128,128], index: 1, kind: input, shape index: {}]   ;;  %s187_s2 = inlined_call_operand.vmem [shape: f32[1,128], index: 2, kind: input, shape index: {}]   ;;  %s188_s0 = inlined_call_operand.vmem [shape: f32[16,128], index: 0, kind: input, shape index: {}]   ;;  %s189_s3 = inlined_call_operand.vmem [shape: f32[16,128], index: 3, kind: output, shape index: {}]  }
   0x1   :  { %v39_v0 = vld [vmem:[%s186_s1 + $0x78] sm:$0xff]  ;;  %v38_v1 = vld [vmem:[%s186_s1 + $0x70] sm:$0xff]  ;;  %v37_v2 = vld [vmem:[%s186_s1 + $0x68] sm:$0xff] }
   0x2   :  { %40 = vmatpush.msra.mxu0 %v39_v0  ;;  %86 = vmatpush.msra.mxu1 %v39_v0  ;;  %v36_v3 = vld [vmem:[%s186_s1 + $0x60] sm:$0xff]  ;;  %v35_v4 = vld [vmem:[%s186_s1 + $0x58] sm:$0xff]  ;;  %v34_v5 = vld [vmem:[%s186_s1 + $0x50] sm:$0xff] }
   0x3   :  { %v33_v6 = vld [vmem:[%s186_s1 + $0x48] sm:$0xff]  ;;  %v32_v7 = vld [vmem:[%s186_s1 + $0x40] sm:$0xff]  ;;  %v31_v8 = vld [vmem:[%s186_s1 + $0x38] sm:$0xff] }
   0x4   :  { %41 = vmatpush.msra.mxu0 %v38_v1  ;;  %87 = vmatpush.msra.mxu1 %v38_v1  ;;  %v30_v9 = vld [vmem:[%s186_s1 + $0x30] sm:$0xff]  ;;  %v29_v10 = vld [vmem:[%s186_s1 + $0x28] sm:$0xff]  ;;  %v28_v11 = vld [vmem:[%s186_s1 + $0x20] sm:$0xff] }
   0x5   :  { %v27_v12 = vld [vmem:[%s186_s1 + $0x18] sm:$0xff]  ;;  %v26_v13 = vld [vmem:[%s186_s1 + $0x10] sm:$0xff]  ;;  %v25_v14 = vld [vmem:[%s186_s1 + $0x8] sm:$0xff] }
   0x6   :  { %42 = vmatpush.msra.mxu0 %v37_v2  ;;  %88 = vmatpush.msra.mxu1 %v37_v2  ;;  %v24_v15 = vld [vmem:[%s186_s1] sm:$0xff]  ;;  %v23_v17 = vld [vmem:[%s188_s0 + $0x8] sm:$0xff] }
   0x7   :  { %v22_v16 = vld [vmem:[%s188_s0] sm:$0xff] }
   0x8   :  { %43 = vmatpush.msra.mxu0 %v36_v3  ;;  %89 = vmatpush.msra.mxu1 %v36_v3  ;;  %v102_v18 = vld [vmem:[%s187_s2] ss:$0 sm:$0xff] }
   0xa   :  { %44 = vmatpush.msra.mxu0 %v35_v4  ;;  %90 = vmatpush.msra.mxu1 %v35_v4 }
   0xc   :  { %45 = vmatpush.msra.mxu0 %v34_v5  ;;  %91 = vmatpush.msra.mxu1 %v34_v5 }
   0xe   :  { %46 = vmatpush.msra.mxu0 %v33_v6  ;;  %92 = vmatpush.msra.mxu1 %v33_v6 }
  0x10   :  { %47 = vmatpush.msra.mxu0 %v32_v7  ;;  %93 = vmatpush.msra.mxu1 %v32_v7 }
  0x12   :  { %48 = vmatpush.msra.mxu0 %v31_v8  ;;  %94 = vmatpush.msra.mxu1 %v31_v8 }
  0x14   :  { %49 = vmatpush.msra.mxu0 %v30_v9  ;;  %95 = vmatpush.msra.mxu1 %v30_v9 }
  0x16   :  { %50 = vmatpush.msra.mxu0 %v29_v10  ;;  %96 = vmatpush.msra.mxu1 %v29_v10 }
  0x18   :  { %51 = vmatpush.msra.mxu0 %v28_v11  ;;  %97 = vmatpush.msra.mxu1 %v28_v11 }
  0x1a   :  { %52 = vmatpush.msra.mxu0 %v27_v12  ;;  %98 = vmatpush.msra.mxu1 %v27_v12 }
  0x1c   :  { %53 = vmatpush.msra.mxu0 %v26_v13  ;;  %99 = vmatpush.msra.mxu1 %v26_v13 }
  0x1e   :  { %54 = vmatpush.msra.mxu0 %v25_v14  ;;  %100 = vmatpush.msra.mxu1 %v25_v14 }
  0x20   :  { %55 = vmatpush.msra.mxu0 %v24_v15  ;;  %101 = vmatpush.msra.mxu1 %v24_v15 }
  0x21   :  { %56 = vmatmul.f32.vlgmr.msra.gmra.mxu0 %v22_v16  ;;  %59 = vmatmul.f32.vlgmr.msra.gmra.mxu1 %v23_v17 }
  0x9e   :  { %v57_v19 = vpop.f32.mrf.mxu0  ;;  %v60_v20 = vpop.f32.mrf.mxu1 }
  0x9f   :  { %v76_v21 = vadd.f32 %v102_v18, %v57_v19  ;;  %v77_v22 = vadd.f32 %v102_v18, %v60_v20 }
  0xa1   :  { %v78_v23 = vmax.f32 %v76_v21, 0.0  ;;  %v79_v24 = vmax.f32 %v77_v22, 0.0 }
  0xa3   :  { %80 = vst [vmem:[%s189_s3] sm:$0xff] %v78_v23 }
  0xa4   :  { %81 = vst [vmem:[%s189_s3 + $0x8] sm:$0xff] %v79_v24 }

// kernel: transformer_decoder_forward.44
= control target key start
LH: loop header
LB: loop body
LE: loop exit
PB: predicated region body
PF: predicated region fallthrough
CT: control target
= control target key end

     0   :  { %vm16_vm0 = vcmask 261120   ;;  %v95_v4 = vmov 32.0   ;;  %s140_s0 = inlined_call_operand.vmem [shape: f32[16,32], index: 0, kind: input, shape index: {}]   ;;  %s141_s1 = inlined_call_operand.vmem [shape: f32[1,32], index: 1, kind: input, shape index: {}]   ;;  %s142_s2 = inlined_call_operand.vmem [shape: f32[1,32], index: 2, kind: input, shape index: {}]   ;;  %s143_s3 = inlined_call_operand.vmem [shape: f32[16,32], index: 3, kind: output, shape index: {}]  }
   0x1   :  { %v14_v0 = vld [vmem:[%s140_s0] sm:$0xff]  ;;  %v15_v2 = vld [vmem:[%s140_s0 + $0x8] sm:$0xff]  ;;  %89 = vrcp.f32 %v95_v4 }
   0x2   :  { %v17_v1 = vsel %vm16_vm0, %v14_v0, 0.0  ;;  %v20_v3 = vsel %vm16_vm0, %v15_v2, 0.0  ;;  %v87_v35 = vld [vmem:[%s141_s1] ss:$0 sm:$0xff] }
   0x3   :  { %18 = vadd.xlane.f32.xlu0 %v17_v1  ;;  %v88_v38 = vld [vmem:[%s142_s2] ss:$0 sm:$0xff] }
   0x7   :  { %v90_v5 = vpop.eup %89 }
   0x8   :  { %v24_v6 = vmul.f32 32.0, %v90_v5  ;;  %vm28_vm1 = vweird.f32 %v90_v5 }
   0xa   :  { %v25_v7 = vsub.f32 1.0, %v24_v6 }
   0xb   :  { %21 = vadd.xlane.f32.xlu0 %v20_v3 }
   0xc   :  { %v26_v8 = vmul.f32 %v90_v5, %v25_v7 }
   0xe   :  { %v27_v9 = vadd.f32 %v90_v5, %v26_v8 }
  0x10   :  { %v29_v10 = vsel %vm28_vm1, %v90_v5, %v27_v9 }
  0x76   :  { %v19_v11 = vpop.xlane.xlu0 %18 }
  0x77   :  { %v30_v12 = vmul.f32 %v29_v10, %v19_v11 }
  0x79   :  { %v32_v13 = vsub.f32 %v14_v0, %v30_v12 }
  0x7b   :  { %v34_v14 = vmul.f32 %v32_v13, %v32_v13 }
  0x7d   :  { %v36_v15 = vsel %vm16_vm0, %v34_v14, 0.0 }
  0x7e   :  { %37 = vadd.xlane.f32.xlu1 %v36_v15  ;;  %v22_v16 = vpop.xlane.xlu0 %21 }
  0x7f   :  { %v31_v17 = vmul.f32 %v29_v10, %v22_v16 }
  0x81   :  { %v33_v18 = vsub.f32 %v15_v2, %v31_v17 }
  0x83   :  { %v35_v19 = vmul.f32 %v33_v18, %v33_v18 }
  0x85   :  { %v39_v20 = vsel %vm16_vm0, %v35_v19, 0.0 }
  0x86   :  { %40 = vadd.xlane.f32.xlu1 %v39_v20 }
  0xf1   :  { %v38_v21 = vpop.xlane.xlu1 %37 }
  0xf2   :  { %v42_v22 = vmul.f32 %v38_v21, %v29_v10 }
  0xf4   :  { %v44_v23 = vadd.f32 1e-05, %v42_v22 }
  0xf6   :  { %91 = vrsqrt.f32 %v44_v23  ;;  %vm52_vm3 = vweird.f32 %v44_v23 }
  0xf9   :  { %v41_v24 = vpop.xlane.xlu1 %40 }
  0xfa   :  { %v43_v25 = vmul.f32 %v41_v24, %v29_v10 }
  0xfc   :  { %v92_v26 = vpop.eup %91  ;;  %v45_v27 = vadd.f32 1e-05, %v43_v25 }
  0xfd   :  { %v47_v28 = vmul.f32 %v92_v26, %v44_v23  ;;  %vm53_vm2 = vweird.f32 %v92_v26 }
  0xfe   :  { %93 = vrsqrt.f32 %v45_v27  ;;  %vm54_vm4 = vmor %vm52_vm3, %vm53_vm2  ;;  %vm62_vm6 = vweird.f32 %v45_v27 }
  0xff   :  { %v48_v29 = vmul.f32 %v92_v26, %v47_v28 }
 0x101   :  { %v49_v30 = vmul.f32 0.5, %v48_v29 }
 0x103   :  { %v50_v31 = vsub.f32 1.5, %v49_v30 }
 0x104   :  { %v94_v32 = vpop.eup %93 }
 0x105   :  { %v51_v33 = vmul.f32 %v92_v26, %v50_v31  ;;  %v57_v34 = vmul.f32 %v94_v32, %v45_v27  ;;  %vm63_vm5 = vweird.f32 %v94_v32 }
 0x106   :  { %vm64_vm7 = vmor %vm62_vm6, %vm63_vm5 }
 0x107   :  { %v55_v36 = vsel %vm54_vm4, %v92_v26, %v51_v33  ;;  %v58_v37 = vmul.f32 %v94_v32, %v57_v34 }
 0x108   :  { %v66_v39 = vmul.f32 %v55_v36, %v32_v13 }
 0x109   :  { %v59_v40 = vmul.f32 0.5, %v58_v37 }
 0x10a   :  { %v72_v41 = vmul.f32 %v87_v35, %v66_v39 }
 0x10b   :  { %v60_v42 = vsub.f32 1.5, %v59_v40 }
 0x10c   :  { %v78_v43 = vadd.f32 %v88_v38, %v72_v41 }
 0x10d   :  { %v61_v44 = vmul.f32 %v94_v32, %v60_v42 }
 0x10e   :  { %80 = vst.msk [vmem:[%s143_s3] sm:$0xff] %vm16_vm0, %v78_v43 }
 0x10f   :  { %v65_v45 = vsel %vm64_vm7, %v94_v32, %v61_v44 }
 0x110   :  { %v67_v46 = vmul.f32 %v65_v45, %v33_v18 }
 0x112   :  { %v73_v47 = vmul.f32 %v87_v35, %v67_v46 }
 0x114   :  { %v79_v48 = vadd.f32 %v88_v38, %v73_v47 }
 0x116   :  { %81 = vst.msk [vmem:[%s143_s3 + $0x8] sm:$0xff] %vm16_vm0, %v79_v48 }

</bundles_post_ra>
